<compile_context>
chip_gen: v7x
topology: tpu7x:2x2x1
jax: 0.10.0
libtpu: 0.0.40
codegen_flags: <defaults>
</compile_context>

<pallas_src>
import functools

import jax
import jax.numpy as jnp
from jax import lax
from jax.experimental import pallas as pl
from jax.experimental.pallas import tpu as pltpu

# The 8 non-center depthwise taps, in the order shared by the host-side mask builder
# and the kernel loop.
_TAPS = tuple((kh, kw) for kh in range(3) for kw in range(3) if (kh, kw) != (1, 1))


def _block_kernel(x_ref, w_ref, pp_ref, m_ref, out_ref, *, width, bblk):
  """Bblk images: branch2 + identity + fused channel_shuffle, channels-on-sublanes.

  x_ref  : (Bblk, C, HW)   inputs, flattened spatial on lanes
  w_ref  : (Cb + 2C, Cb)   [w1_folded ; w3_folded_shuffled ; P_even]
  pp_ref : (C, 16)         rows :Cb, cols 0..8 = dw taps (BN folded), 9 = b1, 10 = b2;
                           col 11 over all C rows = shuffled b3 (odd rows only)
  m_ref  : (8, HW)         per-tap validity masks (kill circular-roll wrap at edges)
  out_ref: (Bblk, C, HW)   shuffled output (even channels = x1, odd = branch2)
  """
  C, HW = x_ref.shape[1], x_ref.shape[2]
  Cb = C // 2

  w = w_ref[...].astype(jnp.float32)
  w1 = w[:Cb, :]                      # (Cb, Cb) first 1x1 conv, BN folded
  w3 = w[Cb:Cb + C, :]                # (C, Cb)  second 1x1 conv, BN + shuffle folded
  pe = w[Cb + C:, :]                  # (C, Cb)  0/1 scatter of x1 into even channels

  pp = pp_ref[...].astype(jnp.float32)
  b1 = pp[:Cb, 9:10]
  b2 = pp[:Cb, 10:11]
  b3s = pp[:, 11:12]                  # (C, 1) shuffled bias (even rows are 0)
  ctr_w = pp[:Cb, 4:5]                # center tap (kh=1, kw=1)
  tap_w = [pp[:Cb, kh * 3 + kw:kh * 3 + kw + 1] for kh, kw in _TAPS]

  masks = m_ref[...].astype(jnp.float32)
  tap_m = [masks[j:j + 1, :] for j in range(len(_TAPS))]   # hoisted once per grid step

  def body(i, carry):
    x1 = x_ref[i, :Cb, :].astype(jnp.float32)              # identity branch
    x2 = x_ref[i, Cb:, :].astype(jnp.float32)              # branch2 input

    # ---- 1x1 conv (MXU, lane-dense N = HW) + folded BN + ReLU ----
    t = jnp.dot(w1, x2, preferred_element_type=jnp.float32)
    t = jnp.maximum(t + b1, 0.0)

    # ---- depthwise 3x3, stride 1, pad 1: one pltpu.roll per tap (XLU slot, no
    #      padded buffer, no misaligned slices) + precomputed edge-validity masks.
    acc = t * ctr_w
    for j, (kh, kw) in enumerate(_TAPS):
      s = (kh - 1) * width + (kw - 1)                      # flattened spatial offset
      v = pltpu.roll(t, (-s) % HW, axis=1)                 # v[:, p] = t[:, (p+s) % HW]
      acc = acc + v * tap_m[j] * tap_w[j]
    acc = acc + b2                                         # folded BN (no activation)

    # ---- second 1x1 conv with channel_shuffle folded into the weights:
    #      odd output channels = branch2, even channels = x1 (0/1 scatter matmul).
    u = jnp.dot(w3, acc, preferred_element_type=jnp.float32)
    u = jnp.maximum(u + b3s, 0.0)                          # even rows stay exactly 0
    out = u + jnp.dot(pe, x1, preferred_element_type=jnp.float32)
    out_ref[i] = out.astype(out_ref.dtype)
    return carry

  lax.fori_loop(0, bblk, body, 0, unroll=True)


def _choose_bblk(batch, c, hw, itemsize, vmem_budget=12 * 1024 * 1024):
  """Largest batch block fitting a conservative double-buffered VMEM budget,
  preferring >= 4 grid steps (pipeline / v7x megacore) when the batch allows."""
  per_image = 2 * 2 * c * hw * itemsize          # in + out, double-buffered
  cap = max(1, vmem_budget // per_image)
  divisors = [d for d in range(1, batch + 1) if batch % d == 0 and d <= cap]
  if not divisors:
    return 1
  preferred = [d for d in divisors if batch // d >= 4]
  return max(preferred) if preferred else max(divisors)


@jax.jit
def inverted_residual_stride1(x_nchw, w_pack, pp_pack, masks):
  """Forward pass of the stride=1 InvertedResidual block. NCHW in, NCHW out."""
  B, C, H, W = x_nchw.shape
  HW = H * W
  Cb = C // 2
  bblk = _choose_bblk(B, C, HW, jnp.dtype(x_nchw.dtype).itemsize)
  x = x_nchw.reshape(B, C, HW)                   # free view; NCHW consumed directly
  out = pl.pallas_call(
      functools.partial(_block_kernel, width=W, bblk=bblk),
      out_shape=jax.ShapeDtypeStruct((B, C, HW), x_nchw.dtype),
      grid_spec=pltpu.PrefetchScalarGridSpec(
          num_scalar_prefetch=0,
          grid=(B // bblk,),
          in_specs=[
              pl.BlockSpec((bblk, C, HW), lambda b: (b, 0, 0)),     # images
              pl.BlockSpec((Cb + 2 * C, Cb), lambda b: (0, 0)),     # packed weights
              pl.BlockSpec((C, 16), lambda b: (0, 0)),              # taps + biases
              pl.BlockSpec((8, HW), lambda b: (0, 0)),              # tap masks
          ],
          out_specs=pl.BlockSpec((bblk, C, HW), lambda b: (b, 0, 0)),
      ),
      compiler_params=pltpu.CompilerParams(
          dimension_semantics=("parallel",),
          vmem_limit_bytes=32 * 1024 * 1024,
      ),
  )(x, w_pack, pp_pack, masks)
  return out.reshape(B, C, H, W)


def _fold_bn(gamma, beta, mean, var, eps=1e-5):
  scale = gamma / jnp.sqrt(var + eps)
  bias = beta - mean * scale
  return scale.reshape(1, -1), bias.reshape(1, -1)


def make_params(key, cb):
  """Deterministic synthetic parameters for the stride=1 block (raw, un-packed)."""
  ks = jax.random.split(key, 12)
  u = lambda k, s: jax.random.uniform(k, s, jnp.float32, 0.5, 1.5)
  n = lambda k, s, sc=0.1: sc * jax.random.normal(k, s, jnp.float32)

  w1 = n(ks[0], (cb, cb), 0.2)          # 1x1 conv, stored as (Cin, Cout)
  s1, b1 = _fold_bn(u(ks[1], (cb,)), n(ks[2], (cb,)), n(ks[3], (cb,)), u(ks[4], (cb,)))
  wdw = n(ks[5], (3, 3, cb), 0.2)       # depthwise 3x3, per-channel taps
  s2, b2 = _fold_bn(u(ks[6], (cb,)), n(ks[7], (cb,)), n(ks[8], (cb,)), u(ks[9], (cb,)))
  w3 = n(ks[10], (cb, cb), 0.2)
  s3, b3 = _fold_bn(u(ks[11], (cb,)), jnp.zeros((cb,)), jnp.zeros((cb,)), jnp.ones((cb,)))
  return dict(w1=w1, s1=s1, b1=b1, wdw=wdw, s2=s2, b2=b2, w3=w3, s3=s3, b3=b3)


def pack_params(p):
  """One-time host packing: fold BN scales + channel_shuffle into the weights."""
  cb = p["w1"].shape[0]
  C = 2 * cb
  s1, b1 = p["s1"][0], p["b1"][0]
  s2, b2 = p["s2"][0], p["b2"][0]
  s3, b3 = p["s3"][0], p["b3"][0]

  w1f = s1[:, None] * p["w1"].T                               # (Cb, Cb) (Cout, Cin)
  w3f = s3[:, None] * p["w3"].T                               # (Cb, Cb)
  # channel_shuffle(groups=2): out[2c] = x1[c], out[2c+1] = branch2[c]
  w3s = jnp.zeros((C, cb), jnp.float32).at[1::2, :].set(w3f)  # odd rows = conv weights
  pe = jnp.zeros((C, cb), jnp.float32).at[
      jnp.arange(0, C, 2), jnp.arange(cb)].set(1.0)           # even rows pick x1
  w_pack = jnp.concatenate([w1f, w3s, pe], axis=0)            # (Cb + 2C, Cb)

  taps = (p["wdw"] * s2).reshape(9, cb).T                     # (Cb, 9), BN folded
  pp = jnp.zeros((C, 16), jnp.float32)
  pp = pp.at[:cb, 0:9].set(taps)
  pp = pp.at[:cb, 9].set(b1)
  pp = pp.at[:cb, 10].set(b2)
  pp = pp.at[1::2, 11].set(b3)                                # shuffled b3 (odd rows)
  return w_pack.astype(jnp.float32), pp.astype(jnp.float32)


def make_tap_masks(H, W):
  """Per-tap source-validity masks over the flattened spatial axis (8, H*W)."""
  row = jnp.arange(H * W, dtype=jnp.int32) // W
  col = jnp.arange(H * W, dtype=jnp.int32) % W
  rows = []
  for kh, kw in _TAPS:
    dh, dw = kh - 1, kw - 1
    ok = ((row + dh >= 0) & (row + dh < H) & (col + dw >= 0) & (col + dw < W))
    rows.append(ok.astype(jnp.float32))
  return jnp.stack(rows, axis=0)


def _reference(x_nchw, p):
  """Pure-JAX reference (same math, no Pallas) for the correctness check."""
  B, C, H, W = x_nchw.shape
  Cb = C // 2
  x = jnp.transpose(x_nchw, (0, 2, 3, 1))
  x1, x2 = x[..., :Cb], x[..., Cb:]
  t = jnp.maximum(jnp.einsum("bhwc,cd->bhwd", x2, p["w1"]) * p["s1"][0] + p["b1"][0], 0.0)
  tp = jnp.pad(t, ((0, 0), (1, 1), (1, 1), (0, 0)))
  acc = jnp.zeros_like(t)
  for kh in range(3):
    for kw in range(3):
      acc = acc + tp[:, kh:kh + H, kw:kw + W, :] * p["wdw"][kh, kw]
  acc = acc * p["s2"][0] + p["b2"][0]
  u = jnp.maximum(jnp.einsum("bhwc,cd->bhwd", acc, p["w3"]) * p["s3"][0] + p["b3"][0], 0.0)
  out = jnp.concatenate([x1, u], axis=-1)
  out = out.reshape(B, H, W, 2, Cb).transpose(0, 1, 2, 4, 3).reshape(B, H, W, C)
  return jnp.transpose(out, (0, 3, 1, 2))


if __name__ == "__main__":
  key = jax.random.PRNGKey(0)
  kx, kp = jax.random.split(key)

  B, C, H, W = 2, 32, 16, 16          # stride=1 requires inp == oup == 2*branch_features
  x = jax.random.normal(kx, (B, C, H, W), jnp.float32)
  params = make_params(kp, C // 2)
  w_pack, pp_pack = pack_params(params)
  masks = make_tap_masks(H, W)

  out = inverted_residual_stride1(x, w_pack, pp_pack, masks)
  out = jax.block_until_ready(out)

  ref = _reference(x, params)
  assert out.shape == (B, C, H, W)
  assert jnp.allclose(out, ref, rtol=1e-4, atol=1e-4), "Pallas kernel mismatch vs reference"

  print("KERNEL_OK")
</pallas_src>

<mosaic_0001>
module attributes {stable_mosaic.version = 11 : i64} {
  func.func @_block_kernel(%arg0: i32, %arg1: memref<2x32x256xf32, #tpu.memory_space<vmem>>, %arg2: memref<80x16xf32, #tpu.memory_space<vmem>>, %arg3: memref<32x16xf32, #tpu.memory_space<vmem>>, %arg4: memref<8x256xf32, #tpu.memory_space<vmem>>, %arg5: memref<2x32x256xf32, #tpu.memory_space<vmem>>) attributes {dimension_semantics = [#tpu.dimension_semantics<parallel>], iteration_bounds = array<i64: 1>, scalar_prefetch = 0 : i64, scratch_operands = 0 : i64, tpu.core_type = #tpu.core_type<tc>, window_params = [{transform_indices = @transform_0, window_bounds = array<i64: 2, 32, 256>}, {pipeline_mode = #tpu.pipeline_mode<synchronous>, transform_indices = @transform_1, window_bounds = array<i64: 80, 16>}, {pipeline_mode = #tpu.pipeline_mode<synchronous>, transform_indices = @transform_2, window_bounds = array<i64: 32, 16>}, {pipeline_mode = #tpu.pipeline_mode<synchronous>, transform_indices = @transform_3, window_bounds = array<i64: 8, 256>}, {transform_indices = @transform_4, window_bounds = array<i64: 2, 32, 256>}]} {
    %c0 = arith.constant 0 : index
    %c0_0 = arith.constant 0 : index
    %0 = vector.load %arg2[%c0, %c0_0] : memref<80x16xf32, #tpu.memory_space<vmem>>, vector<80x16xf32>
    %1 = vector.extract_strided_slice %0 {offsets = [0, 0], sizes = [16, 16], strides = [1, 1]} : vector<80x16xf32> to vector<16x16xf32>
    %2 = vector.extract_strided_slice %0 {offsets = [16, 0], sizes = [32, 16], strides = [1, 1]} : vector<80x16xf32> to vector<32x16xf32>
    %3 = vector.extract_strided_slice %0 {offsets = [48, 0], sizes = [32, 16], strides = [1, 1]} : vector<80x16xf32> to vector<32x16xf32>
    %c0_1 = arith.constant 0 : index
    %c0_2 = arith.constant 0 : index
    %4 = vector.load %arg3[%c0_1, %c0_2] : memref<32x16xf32, #tpu.memory_space<vmem>>, vector<32x16xf32>
    %5 = vector.extract_strided_slice %4 {offsets = [0, 9], sizes = [16, 1], strides = [1, 1]} : vector<32x16xf32> to vector<16x1xf32>
    %6 = vector.extract_strided_slice %4 {offsets = [0, 10], sizes = [16, 1], strides = [1, 1]} : vector<32x16xf32> to vector<16x1xf32>
    %7 = vector.extract_strided_slice %4 {offsets = [0, 11], sizes = [32, 1], strides = [1, 1]} : vector<32x16xf32> to vector<32x1xf32>
    %8 = vector.extract_strided_slice %4 {offsets = [0, 4], sizes = [16, 1], strides = [1, 1]} : vector<32x16xf32> to vector<16x1xf32>
    %9 = vector.extract_strided_slice %4 {offsets = [0, 0], sizes = [16, 1], strides = [1, 1]} : vector<32x16xf32> to vector<16x1xf32>
    %10 = vector.extract_strided_slice %4 {offsets = [0, 1], sizes = [16, 1], strides = [1, 1]} : vector<32x16xf32> to vector<16x1xf32>
    %11 = vector.extract_strided_slice %4 {offsets = [0, 2], sizes = [16, 1], strides = [1, 1]} : vector<32x16xf32> to vector<16x1xf32>
    %12 = vector.extract_strided_slice %4 {offsets = [0, 3], sizes = [16, 1], strides = [1, 1]} : vector<32x16xf32> to vector<16x1xf32>
    %13 = vector.extract_strided_slice %4 {offsets = [0, 5], sizes = [16, 1], strides = [1, 1]} : vector<32x16xf32> to vector<16x1xf32>
    %14 = vector.extract_strided_slice %4 {offsets = [0, 6], sizes = [16, 1], strides = [1, 1]} : vector<32x16xf32> to vector<16x1xf32>
    %15 = vector.extract_strided_slice %4 {offsets = [0, 7], sizes = [16, 1], strides = [1, 1]} : vector<32x16xf32> to vector<16x1xf32>
    %16 = vector.extract_strided_slice %4 {offsets = [0, 8], sizes = [16, 1], strides = [1, 1]} : vector<32x16xf32> to vector<16x1xf32>
    %c0_3 = arith.constant 0 : index
    %c0_4 = arith.constant 0 : index
    %17 = vector.load %arg4[%c0_3, %c0_4] : memref<8x256xf32, #tpu.memory_space<vmem>>, vector<8x256xf32>
    %18 = vector.extract_strided_slice %17 {offsets = [0, 0], sizes = [1, 256], strides = [1, 1]} : vector<8x256xf32> to vector<1x256xf32>
    %19 = vector.extract_strided_slice %17 {offsets = [1, 0], sizes = [1, 256], strides = [1, 1]} : vector<8x256xf32> to vector<1x256xf32>
    %20 = vector.extract_strided_slice %17 {offsets = [2, 0], sizes = [1, 256], strides = [1, 1]} : vector<8x256xf32> to vector<1x256xf32>
    %21 = vector.extract_strided_slice %17 {offsets = [3, 0], sizes = [1, 256], strides = [1, 1]} : vector<8x256xf32> to vector<1x256xf32>
    %22 = vector.extract_strided_slice %17 {offsets = [4, 0], sizes = [1, 256], strides = [1, 1]} : vector<8x256xf32> to vector<1x256xf32>
    %23 = vector.extract_strided_slice %17 {offsets = [5, 0], sizes = [1, 256], strides = [1, 1]} : vector<8x256xf32> to vector<1x256xf32>
    %24 = vector.extract_strided_slice %17 {offsets = [6, 0], sizes = [1, 256], strides = [1, 1]} : vector<8x256xf32> to vector<1x256xf32>
    %25 = vector.extract_strided_slice %17 {offsets = [7, 0], sizes = [1, 256], strides = [1, 1]} : vector<8x256xf32> to vector<1x256xf32>
    %c0_i32 = arith.constant 0 : i32
    %26 = arith.index_cast %c0_i32 : i32 to index
    %c0_5 = arith.constant 0 : index
    %c0_6 = arith.constant 0 : index
    %27 = vector.load %arg1[%26, %c0_5, %c0_6] : memref<2x32x256xf32, #tpu.memory_space<vmem>>, vector<1x16x256xf32>
    %28 = vector.shape_cast %27 : vector<1x16x256xf32> to vector<16x256xf32>
    %29 = arith.index_cast %c0_i32 : i32 to index
    %c16 = arith.constant 16 : index
    %c0_7 = arith.constant 0 : index
    %30 = vector.load %arg1[%29, %c16, %c0_7] : memref<2x32x256xf32, #tpu.memory_space<vmem>>, vector<1x16x256xf32>
    %31 = vector.shape_cast %30 : vector<1x16x256xf32> to vector<16x256xf32>
    %cst = arith.constant dense<0.000000e+00> : vector<16x256xf32>
    %32 = tpu.matmul %1, %31, %cst {dimension_numbers = #tpu.dot_dimension_numbers<[1], [0], [0], [1], [0, 0, 1, 1], [], []>} : vector<16x16xf32>, vector<16x256xf32>, vector<16x256xf32> -> vector<16x256xf32>
    %33 = vector.broadcast %5 : vector<16x1xf32> to vector<16x256xf32>
    %34 = arith.addf %32, %33 : vector<16x256xf32>
    %cst_8 = arith.constant 0.000000e+00 : f32
    %35 = vector.broadcast %cst_8 : f32 to vector<16x256xf32>
    %36 = arith.maximumf %34, %35 : vector<16x256xf32>
    %37 = vector.broadcast %8 : vector<16x1xf32> to vector<16x256xf32>
    %38 = arith.mulf %36, %37 : vector<16x256xf32>
    %c17_i32 = arith.constant 17 : i32
    %39 = tpu.dynamic_rotate %36 by %c17_i32 dim 1 : vector<16x256xf32>, i32 -> vector<16x256xf32>
    %40 = vector.broadcast %18 : vector<1x256xf32> to vector<16x256xf32>
    %41 = arith.mulf %39, %40 : vector<16x256xf32>
    %42 = vector.broadcast %9 : vector<16x1xf32> to vector<16x256xf32>
    %43 = arith.mulf %41, %42 : vector<16x256xf32>
    %44 = arith.addf %38, %43 : vector<16x256xf32>
    %c16_i32 = arith.constant 16 : i32
    %45 = tpu.dynamic_rotate %36 by %c16_i32 dim 1 : vector<16x256xf32>, i32 -> vector<16x256xf32>
    %46 = vector.broadcast %19 : vector<1x256xf32> to vector<16x256xf32>
    %47 = arith.mulf %45, %46 : vector<16x256xf32>
    %48 = vector.broadcast %10 : vector<16x1xf32> to vector<16x256xf32>
    %49 = arith.mulf %47, %48 : vector<16x256xf32>
    %50 = arith.addf %44, %49 : vector<16x256xf32>
    %c15_i32 = arith.constant 15 : i32
    %51 = tpu.dynamic_rotate %36 by %c15_i32 dim 1 : vector<16x256xf32>, i32 -> vector<16x256xf32>
    %52 = vector.broadcast %20 : vector<1x256xf32> to vector<16x256xf32>
    %53 = arith.mulf %51, %52 : vector<16x256xf32>
    %54 = vector.broadcast %11 : vector<16x1xf32> to vector<16x256xf32>
    %55 = arith.mulf %53, %54 : vector<16x256xf32>
    %56 = arith.addf %50, %55 : vector<16x256xf32>
    %c1_i32 = arith.constant 1 : i32
    %57 = tpu.dynamic_rotate %36 by %c1_i32 dim 1 : vector<16x256xf32>, i32 -> vector<16x256xf32>
    %58 = vector.broadcast %21 : vector<1x256xf32> to vector<16x256xf32>
    %59 = arith.mulf %57, %58 : vector<16x256xf32>
    %60 = vector.broadcast %12 : vector<16x1xf32> to vector<16x256xf32>
    %61 = arith.mulf %59, %60 : vector<16x256xf32>
    %62 = arith.addf %56, %61 : vector<16x256xf32>
    %c255_i32 = arith.constant 255 : i32
    %63 = tpu.dynamic_rotate %36 by %c255_i32 dim 1 : vector<16x256xf32>, i32 -> vector<16x256xf32>
    %64 = vector.broadcast %22 : vector<1x256xf32> to vector<16x256xf32>
    %65 = arith.mulf %63, %64 : vector<16x256xf32>
    %66 = vector.broadcast %13 : vector<16x1xf32> to vector<16x256xf32>
    %67 = arith.mulf %65, %66 : vector<16x256xf32>
    %68 = arith.addf %62, %67 : vector<16x256xf32>
    %c241_i32 = arith.constant 241 : i32
    %69 = tpu.dynamic_rotate %36 by %c241_i32 dim 1 : vector<16x256xf32>, i32 -> vector<16x256xf32>
    %70 = vector.broadcast %23 : vector<1x256xf32> to vector<16x256xf32>
    %71 = arith.mulf %69, %70 : vector<16x256xf32>
    %72 = vector.broadcast %14 : vector<16x1xf32> to vector<16x256xf32>
    %73 = arith.mulf %71, %72 : vector<16x256xf32>
    %74 = arith.addf %68, %73 : vector<16x256xf32>
    %c240_i32 = arith.constant 240 : i32
    %75 = tpu.dynamic_rotate %36 by %c240_i32 dim 1 : vector<16x256xf32>, i32 -> vector<16x256xf32>
    %76 = vector.broadcast %24 : vector<1x256xf32> to vector<16x256xf32>
    %77 = arith.mulf %75, %76 : vector<16x256xf32>
    %78 = vector.broadcast %15 : vector<16x1xf32> to vector<16x256xf32>
    %79 = arith.mulf %77, %78 : vector<16x256xf32>
    %80 = arith.addf %74, %79 : vector<16x256xf32>
    %c239_i32 = arith.constant 239 : i32
    %81 = tpu.dynamic_rotate %36 by %c239_i32 dim 1 : vector<16x256xf32>, i32 -> vector<16x256xf32>
    %82 = vector.broadcast %25 : vector<1x256xf32> to vector<16x256xf32>
    %83 = arith.mulf %81, %82 : vector<16x256xf32>
    %84 = vector.broadcast %16 : vector<16x1xf32> to vector<16x256xf32>
    %85 = arith.mulf %83, %84 : vector<16x256xf32>
    %86 = arith.addf %80, %85 : vector<16x256xf32>
    %87 = vector.broadcast %6 : vector<16x1xf32> to vector<16x256xf32>
    %88 = arith.addf %86, %87 : vector<16x256xf32>
    %cst_9 = arith.constant dense<0.000000e+00> : vector<32x256xf32>
    %89 = tpu.matmul %2, %88, %cst_9 {dimension_numbers = #tpu.dot_dimension_numbers<[1], [0], [0], [1], [0, 0, 1, 1], [], []>} : vector<32x16xf32>, vector<16x256xf32>, vector<32x256xf32> -> vector<32x256xf32>
    %90 = vector.broadcast %7 : vector<32x1xf32> to vector<32x256xf32>
    %91 = arith.addf %89, %90 : vector<32x256xf32>
    %cst_10 = arith.constant 0.000000e+00 : f32
    %92 = vector.broadcast %cst_10 : f32 to vector<32x256xf32>
    %93 = arith.maximumf %91, %92 : vector<32x256xf32>
    %cst_11 = arith.constant dense<0.000000e+00> : vector<32x256xf32>
    %94 = tpu.matmul %3, %28, %cst_11 {dimension_numbers = #tpu.dot_dimension_numbers<[1], [0], [0], [1], [0, 0, 1, 1], [], []>} : vector<32x16xf32>, vector<16x256xf32>, vector<32x256xf32> -> vector<32x256xf32>
    %95 = arith.addf %93, %94 : vector<32x256xf32>
    %96 = arith.index_cast %c0_i32 : i32 to index
    %c0_12 = arith.constant 0 : index
    %c0_13 = arith.constant 0 : index
    %97 = vector.load %arg5[%96, %c0_12, %c0_13] : memref<2x32x256xf32, #tpu.memory_space<vmem>>, vector<1x32x256xf32>
    %98 = vector.shape_cast %97 : vector<1x32x256xf32> to vector<32x256xf32>
    %99 = vector.shape_cast %95 : vector<32x256xf32> to vector<1x32x256xf32>
    tpu.vector_store %arg5[%96, %c0_12, %c0_13], %99 {strides = array<i32>} : memref<2x32x256xf32, #tpu.memory_space<vmem>>, vector<1x32x256xf32>,
    %c1_i32_14 = arith.constant 1 : i32
    %100 = arith.index_cast %c1_i32_14 : i32 to index
    %c0_15 = arith.constant 0 : index
    %c0_16 = arith.constant 0 : index
    %101 = vector.load %arg1[%100, %c0_15, %c0_16] : memref<2x32x256xf32, #tpu.memory_space<vmem>>, vector<1x16x256xf32>
    %102 = vector.shape_cast %101 : vector<1x16x256xf32> to vector<16x256xf32>
    %103 = arith.index_cast %c1_i32_14 : i32 to index
    %c16_17 = arith.constant 16 : index
    %c0_18 = arith.constant 0 : index
    %104 = vector.load %arg1[%103, %c16_17, %c0_18] : memref<2x32x256xf32, #tpu.memory_space<vmem>>, vector<1x16x256xf32>
    %105 = vector.shape_cast %104 : vector<1x16x256xf32> to vector<16x256xf32>
    %cst_19 = arith.constant dense<0.000000e+00> : vector<16x256xf32>
    %106 = tpu.matmul %1, %105, %cst_19 {dimension_numbers = #tpu.dot_dimension_numbers<[1], [0], [0], [1], [0, 0, 1, 1], [], []>} : vector<16x16xf32>, vector<16x256xf32>, vector<16x256xf32> -> vector<16x256xf32>
    %107 = vector.broadcast %5 : vector<16x1xf32> to vector<16x256xf32>
    %108 = arith.addf %106, %107 : vector<16x256xf32>
    %cst_20 = arith.constant 0.000000e+00 : f32
    %109 = vector.broadcast %cst_20 : f32 to vector<16x256xf32>
    %110 = arith.maximumf %108, %109 : vector<16x256xf32>
    %111 = vector.broadcast %8 : vector<16x1xf32> to vector<16x256xf32>
    %112 = arith.mulf %110, %111 : vector<16x256xf32>
    %c17_i32_21 = arith.constant 17 : i32
    %113 = tpu.dynamic_rotate %110 by %c17_i32_21 dim 1 : vector<16x256xf32>, i32 -> vector<16x256xf32>
    %114 = vector.broadcast %18 : vector<1x256xf32> to vector<16x256xf32>
    %115 = arith.mulf %113, %114 : vector<16x256xf32>
    %116 = vector.broadcast %9 : vector<16x1xf32> to vector<16x256xf32>
    %117 = arith.mulf %115, %116 : vector<16x256xf32>
    %118 = arith.addf %112, %117 : vector<16x256xf32>
    %c16_i32_22 = arith.constant 16 : i32
    %119 = tpu.dynamic_rotate %110 by %c16_i32_22 dim 1 : vector<16x256xf32>, i32 -> vector<16x256xf32>
    %120 = vector.broadcast %19 : vector<1x256xf32> to vector<16x256xf32>
    %121 = arith.mulf %119, %120 : vector<16x256xf32>
    %122 = vector.broadcast %10 : vector<16x1xf32> to vector<16x256xf32>
    %123 = arith.mulf %121, %122 : vector<16x256xf32>
    %124 = arith.addf %118, %123 : vector<16x256xf32>
    %c15_i32_23 = arith.constant 15 : i32
    %125 = tpu.dynamic_rotate %110 by %c15_i32_23 dim 1 : vector<16x256xf32>, i32 -> vector<16x256xf32>
    %126 = vector.broadcast %20 : vector<1x256xf32> to vector<16x256xf32>
    %127 = arith.mulf %125, %126 : vector<16x256xf32>
    %128 = vector.broadcast %11 : vector<16x1xf32> to vector<16x256xf32>
    %129 = arith.mulf %127, %128 : vector<16x256xf32>
    %130 = arith.addf %124, %129 : vector<16x256xf32>
    %c1_i32_24 = arith.constant 1 : i32
    %131 = tpu.dynamic_rotate %110 by %c1_i32_24 dim 1 : vector<16x256xf32>, i32 -> vector<16x256xf32>
    %132 = vector.broadcast %21 : vector<1x256xf32> to vector<16x256xf32>
    %133 = arith.mulf %131, %132 : vector<16x256xf32>
    %134 = vector.broadcast %12 : vector<16x1xf32> to vector<16x256xf32>
    %135 = arith.mulf %133, %134 : vector<16x256xf32>
    %136 = arith.addf %130, %135 : vector<16x256xf32>
    %c255_i32_25 = arith.constant 255 : i32
    %137 = tpu.dynamic_rotate %110 by %c255_i32_25 dim 1 : vector<16x256xf32>, i32 -> vector<16x256xf32>
    %138 = vector.broadcast %22 : vector<1x256xf32> to vector<16x256xf32>
    %139 = arith.mulf %137, %138 : vector<16x256xf32>
    %140 = vector.broadcast %13 : vector<16x1xf32> to vector<16x256xf32>
    %141 = arith.mulf %139, %140 : vector<16x256xf32>
    %142 = arith.addf %136, %141 : vector<16x256xf32>
    %c241_i32_26 = arith.constant 241 : i32
    %143 = tpu.dynamic_rotate %110 by %c241_i32_26 dim 1 : vector<16x256xf32>, i32 -> vector<16x256xf32>
    %144 = vector.broadcast %23 : vector<1x256xf32> to vector<16x256xf32>
    %145 = arith.mulf %143, %144 : vector<16x256xf32>
    %146 = vector.broadcast %14 : vector<16x1xf32> to vector<16x256xf32>
    %147 = arith.mulf %145, %146 : vector<16x256xf32>
    %148 = arith.addf %142, %147 : vector<16x256xf32>
    %c240_i32_27 = arith.constant 240 : i32
    %149 = tpu.dynamic_rotate %110 by %c240_i32_27 dim 1 : vector<16x256xf32>, i32 -> vector<16x256xf32>
    %150 = vector.broadcast %24 : vector<1x256xf32> to vector<16x256xf32>
    %151 = arith.mulf %149, %150 : vector<16x256xf32>
    %152 = vector.broadcast %15 : vector<16x1xf32> to vector<16x256xf32>
    %153 = arith.mulf %151, %152 : vector<16x256xf32>
    %154 = arith.addf %148, %153 : vector<16x256xf32>
    %c239_i32_28 = arith.constant 239 : i32
    %155 = tpu.dynamic_rotate %110 by %c239_i32_28 dim 1 : vector<16x256xf32>, i32 -> vector<16x256xf32>
    %156 = vector.broadcast %25 : vector<1x256xf32> to vector<16x256xf32>
    %157 = arith.mulf %155, %156 : vector<16x256xf32>
    %158 = vector.broadcast %16 : vector<16x1xf32> to vector<16x256xf32>
    %159 = arith.mulf %157, %158 : vector<16x256xf32>
    %160 = arith.addf %154, %159 : vector<16x256xf32>
    %161 = vector.broadcast %6 : vector<16x1xf32> to vector<16x256xf32>
    %162 = arith.addf %160, %161 : vector<16x256xf32>
    %cst_29 = arith.constant dense<0.000000e+00> : vector<32x256xf32>
    %163 = tpu.matmul %2, %162, %cst_29 {dimension_numbers = #tpu.dot_dimension_numbers<[1], [0], [0], [1], [0, 0, 1, 1], [], []>} : vector<32x16xf32>, vector<16x256xf32>, vector<32x256xf32> -> vector<32x256xf32>
    %164 = vector.broadcast %7 : vector<32x1xf32> to vector<32x256xf32>
    %165 = arith.addf %163, %164 : vector<32x256xf32>
    %cst_30 = arith.constant 0.000000e+00 : f32
    %166 = vector.broadcast %cst_30 : f32 to vector<32x256xf32>
    %167 = arith.maximumf %165, %166 : vector<32x256xf32>
    %cst_31 = arith.constant dense<0.000000e+00> : vector<32x256xf32>
    %168 = tpu.matmul %3, %102, %cst_31 {dimension_numbers = #tpu.dot_dimension_numbers<[1], [0], [0], [1], [0, 0, 1, 1], [], []>} : vector<32x16xf32>, vector<16x256xf32>, vector<32x256xf32> -> vector<32x256xf32>
    %169 = arith.addf %167, %168 : vector<32x256xf32>
    %170 = arith.index_cast %c1_i32_14 : i32 to index
    %c0_32 = arith.constant 0 : index
    %c0_33 = arith.constant 0 : index
    %171 = vector.load %arg5[%170, %c0_32, %c0_33] : memref<2x32x256xf32, #tpu.memory_space<vmem>>, vector<1x32x256xf32>
    %172 = vector.shape_cast %171 : vector<1x32x256xf32> to vector<32x256xf32>
    %173 = vector.shape_cast %169 : vector<32x256xf32> to vector<1x32x256xf32>
    tpu.vector_store %arg5[%170, %c0_32, %c0_33], %173 {strides = array<i32>} : memref<2x32x256xf32, #tpu.memory_space<vmem>>, vector<1x32x256xf32>,
    %c2_i32 = arith.constant 2 : i32
    return
  }
  func.func @transform_0(%arg0: i32) -> (i32, i32, i32) {
    %c0_i32 = arith.constant 0 : i32
    %c0_i32_0 = arith.constant 0 : i32
    %c0_i32_1 = arith.constant 0 : i32
    return %arg0, %c0_i32, %c0_i32_0 : i32, i32, i32
  }
  func.func @transform_1(%arg0: i32) -> (i32, i32) {
    %c0_i32 = arith.constant 0 : i32
    %c0_i32_0 = arith.constant 0 : i32
    %c0_i32_1 = arith.constant 0 : i32
    return %c0_i32, %c0_i32_0 : i32, i32
  }
  func.func @transform_2(%arg0: i32) -> (i32, i32) {
    %c0_i32 = arith.constant 0 : i32
    %c0_i32_0 = arith.constant 0 : i32
    %c0_i32_1 = arith.constant 0 : i32
    return %c0_i32, %c0_i32_0 : i32, i32
  }
  func.func @transform_3(%arg0: i32) -> (i32, i32) {
    %c0_i32 = arith.constant 0 : i32
    %c0_i32_0 = arith.constant 0 : i32
    %c0_i32_1 = arith.constant 0 : i32
    return %c0_i32, %c0_i32_0 : i32, i32
  }
  func.func @transform_4(%arg0: i32) -> (i32, i32, i32) {
    %c0_i32 = arith.constant 0 : i32
    %c0_i32_0 = arith.constant 0 : i32
    %c0_i32_1 = arith.constant 0 : i32
    return %arg0, %c0_i32, %c0_i32_0 : i32, i32, i32
  }
}

</mosaic_0001>

<bundles_post_ra>
// kernel: inverted_residual_stride1.1
= control target key start
LH: loop header
LB: loop body
LE: loop exit
PB: predicated region body
PF: predicated region fallthrough
CT: control target
= control target key end

     0   :  { %v2354_v3 = vmov 0.0   ;;  %v1338_v4 = vmov 9   ;;  %v1339_v7 = vmov 4   ;;  %vm51_vm0 = vcmask 130048   ;;  %s1349_s5 = smov 111   ;;  %s1350_s6 = smov 17   ;;  %s2349_s0 = inlined_call_operand.vmem [shape: f32[2,32,256], index: 0, kind: input, shape index: {}]   ;;  %s2350_s2 = inlined_call_operand.vmem [shape: f32[32,16], index: 2, kind: input, shape index: {}]   ;;  %s2351_s1 = inlined_call_operand.vmem [shape: f32[80,16], index: 1, kind: input, shape index: {}]   ;;  %s2352_s3 = inlined_call_operand.vmem [shape: f32[8,256], index: 3, kind: input, shape index: {}]   ;;  %s2353_s4 = inlined_call_operand.vmem [shape: f32[2,32,256], index: 4, kind: output, shape index: {}]  }
   0x1   :  { %v38_v0 = vld [vmem:[%s2349_s0 + $0x28] sm:$0xff]  ;;  %v40_v1 = vld [vmem:[%s2349_s0 + $0x38] sm:$0xff]  ;;  %v37_v2 = vld [vmem:[%s2349_s0 + $0x20] sm:$0xff]  ;;  %122 = vmatprep.mubr.f32.mxu0 %v2354_v3  ;;  %1315 = vset.pattern.permute.xlu0 %v1338_v4  ;;  %v1340_v13 = vmov 0   ;;  %v1341_v14 = vmov 1   ;;  %v1342_v15 = vmov 2  }
   0x2   :  { %v1270_v5 = vpack.c.bf16 %v40_v1, %v38_v0  ;;  %v39_v6 = vld [vmem:[%s2349_s0 + $0x30] sm:$0xff]  ;;  %1316 = vset.pattern.permute.xlu1 %v1339_v7  ;;  %587 = vmatprep.mubr.f32.mxu1 %v2354_v3  ;;  %v1400_v9 = vld [vmem:[%s2350_s2] sm:$0xff]  ;;  %v1411_v11 = vld [vmem:[%s2350_s2 + $0x8] sm:$0xff]  ;;  %v1343_v16 = vmov 3   ;;  %v1344_v17 = vmov 5   ;;  %v1345_v18 = vmov 6  }
   0x3   :  { %v1272_v8 = vpack.c.bf16 %v39_v6, %v37_v2  ;;  %2390 = vst [vmem:[#allocation2_spill] sm:$0xff] %v1400_v9  ;;  %43 = vperm.xlu0 %1315, %v1400_v9   ;;  %v1406_v10 = vld [vmem:[%s2351_s1] sm:$0xff]  ;;  %2392 = vst [vmem:[#allocation4_spill] sm:$0xff] %v1411_v11  ;;  %140 = vperm.xlu1 %1316, %v1400_v9   ;;  %v1421_v12 = vld [vmem:[%s2351_s1 + $0x8] sm:$0xff]  ;;  %v1346_v19 = vmov 7   ;;  %v1347_v20 = vmov 8  }
   0x4   :  { %1271 = vmatprep.subr.bf16.mxu0 %v1270_v5  ;;  %2391 = vst [vmem:[#allocation3_spill] sm:$0xff] %v1406_v10  ;;  %2393 = vst [vmem:[#allocation5_spill] sm:$0xff] %v1421_v12  ;;  %v1348_v21 = vmov 10   ;;  %s1351_s7 = smov 16   ;;  %s1352_s8 = smov 15   ;;  %v34_v53 = vld [vmem:[%s2349_s0 + $0x8] sm:$0xff] }
   0x5   :  { %1273 = vmatpush1.bf16.msra.mxu0 %v1272_v8  ;;  %s1353_s9 = smov 127   ;;  %s1354_s10 = smov 1   ;;  %v36_v54 = vld [vmem:[%s2349_s0 + $0x18] sm:$0xff]  ;;  %v33_v55 = vld [vmem:[%s2349_s0] sm:$0xff]  ;;  %v35_v57 = vld [vmem:[%s2349_s0 + $0x10] sm:$0xff] }
   0x6   :  { %s1355_s11 = smov 112   ;;  %s1356_s12 = smov 113   ;;  %v1278_v56 = vpack.c.bf16 %v36_v54, %v34_v53  ;;  %v1280_v58 = vpack.c.bf16 %v35_v57, %v33_v55 }
   0x7   :  { %48 = vperm.xlu0 %1315, %v1411_v11   ;;  %144 = vperm.xlu1 %1316, %v1411_v11  }
   0x8   :  { %1234 = vmatmul.mubr.msk.f32.vlgmr.msra.gmra.mrb[0].mxu0 %vm51_vm0, %v1406_v10  ;;  %1279 = vmatprep.subr.bf16.mxu0 %v1278_v56 }
   0x9   :  { %128 = vmatprep.mubr.f32.mxu0 %v2354_v3  ;;  %1281 = vmatpush1.bf16.msra.mxu0 %v1280_v58 }
   0xb   :  { %1317 = vset.pattern.permute.xlu0 %v1340_v13  ;;  %1318 = vset.pattern.permute.xlu1 %v1340_v13 }
   0xc   :  { %1235 = vmatmul.mubr.msk.f32.gmra.mrb[2].mxu0 %vm51_vm0, %v1421_v12  ;;  %179 = vperm.xlu0 %1317, %v1400_v9  }
   0xd   :  { %183 = vperm.xlu1 %1318, %v1411_v11   ;;  %696 = vmatprep.mubr.f32.mxu0 %v2354_v3 }
  0x10   :  { %1320 = vset.pattern.permute.xlu0 %v1341_v14 }
  0x11   :  { %1319 = vset.pattern.permute.xlu1 %v1341_v14  ;;  %224 = vperm.xlu0 %1320, %v1411_v11  }
  0x12   :  { %220 = vperm.xlu1 %1319, %v1400_v9  }
  0x15   :  { %1321 = vset.pattern.permute.xlu0 %v1342_v15 }
  0x16   :  { %1322 = vset.pattern.permute.xlu1 %v1342_v15  ;;  %261 = vperm.xlu0 %1321, %v1400_v9  }
  0x17   :  { %265 = vperm.xlu1 %1322, %v1411_v11  }
  0x1a   :  { %1324 = vset.pattern.permute.xlu0 %v1343_v16 }
  0x1b   :  { %1323 = vset.pattern.permute.xlu1 %v1343_v16  ;;  %306 = vperm.xlu0 %1324, %v1411_v11   ;;  %v159_v16 = vlaneseq }
  0x1c   :  { %302 = vperm.xlu1 %1323, %v1400_v9  }
  0x1f   :  { %1325 = vset.pattern.permute.xlu0 %v1344_v17 }
  0x20   :  { %1326 = vset.pattern.permute.xlu1 %v1344_v17  ;;  %343 = vperm.xlu0 %1325, %v1400_v9  }
  0x21   :  { %347 = vperm.xlu1 %1326, %v1411_v11  }
  0x24   :  { %1328 = vset.pattern.permute.xlu0 %v1345_v18 }
  0x25   :  { %1327 = vset.pattern.permute.xlu1 %v1345_v18  ;;  %388 = vperm.xlu0 %1328, %v1411_v11   ;;  %v1593_v18 = vshrl.u32 %v159_v16, 7 }
  0x26   :  { %384 = vperm.xlu1 %1327, %v1400_v9  }
  0x27   :  { %v250_v56 = vsub.s32 2, %v1593_v18  ;;  %v332_v57 = vsub.s32 4, %v1593_v18 }
  0x29   :  { %1329 = vset.pattern.permute.xlu0 %v1346_v19 }
  0x2a   :  { %1330 = vset.pattern.permute.xlu1 %v1346_v19  ;;  %425 = vperm.xlu0 %1329, %v1400_v9  }
  0x2b   :  { %429 = vperm.xlu1 %1330, %v1411_v11  }
  0x2e   :  { %1332 = vset.pattern.permute.xlu0 %v1347_v20 }
  0x2f   :  { %1331 = vset.pattern.permute.xlu1 %v1347_v20  ;;  %470 = vperm.xlu0 %1332, %v1411_v11  }
  0x30   :  { %466 = vperm.xlu1 %1331, %v1400_v9  }
  0x33   :  { %1333 = vset.pattern.permute.xlu0 %v1348_v21 }
  0x34   :  { %1334 = vset.pattern.permute.xlu1 %v1348_v21  ;;  %v1599_v21 = vand.u32 127, %v159_v16 }
  0x36   :  { %vm161_vm1 = vcmp.lt.s32.totalorder %v1599_v21, 17  ;;  %vm202_vm2 = vcmp.lt.s32.totalorder %v1599_v21, 16  ;;  %vm243_vm3 = vcmp.lt.s32.totalorder %v1599_v21, 15  ;;  %vm325_vm4 = vcmp.lt.s32.totalorder %v1599_v21, 127 }
  0x37   :  { %vm284_vm5 = vcmp.lt.s32.totalorder %v1599_v21, 1  ;;  %vm366_vm6 = vcmp.lt.s32.totalorder %v1599_v21, 113  ;;  %vm407_vm7 = vcmp.lt.s32.totalorder %v1599_v21, 112  ;;  %vm448_vm8 = vcmp.lt.s32.totalorder %v1599_v21, 111 }
  0x82   :  { %v1443_v22 = vpop.permute.xlu0 %43  ;;  %v1512_v36 = vpop.permute.xlu1 %140 }
  0x83   :  { %2394 = vst [vmem:[#allocation6_spill] sm:$0xff] %v1443_v22  ;;  %2396 = vst [vmem:[#allocation8_spill] sm:$0xff] %v1512_v36 }
  0x86   :  { %v1471_v31 = vpop.permute.xlu0 %48  ;;  %v1518_v37 = vpop.permute.xlu1 %144 }
  0x87   :  { %2395 = vst [vmem:[#allocation7_spill] sm:$0xff] %v1471_v31  ;;  %2397 = vst [vmem:[#allocation9_spill] sm:$0xff] %v1518_v37 }
  0x8b   :  { %v1526_v39 = vpop.permute.xlu0 %179 }
  0x8c   :  { %v1522_v38 = vpop.permute.xlu1 %183  ;;  %2398 = vst [vmem:[#allocation10_spill] sm:$0xff] %v1526_v39 }
  0x90   :  { %v1534_v41 = vpop.permute.xlu0 %224 }
  0x91   :  { %v1530_v40 = vpop.permute.xlu1 %220 }
  0x92   :  { %2399 = vst [vmem:[#allocation11_spill] sm:$0xff] %v1530_v40 }
  0x95   :  { %v1539_v43 = vpop.permute.xlu0 %261 }
  0x96   :  { %v1536_v42 = vpop.permute.xlu1 %265 }
  0x9a   :  { %v1543_v45 = vpop.permute.xlu0 %306 }
  0x9b   :  { %v1541_v44 = vpop.permute.xlu1 %302 }
  0x9f   :  { %v1547_v47 = vpop.permute.xlu0 %343 }
  0xa0   :  { %v1545_v46 = vpop.permute.xlu1 %347 }
  0xa4   :  { %v1551_v49 = vpop.permute.xlu0 %388 }
  0xa5   :  { %v1549_v48 = vpop.permute.xlu1 %384  ;;  %2400 = vst [vmem:[#allocation12_spill] sm:$0xff] %v1551_v49 }
  0xa9   :  { %v1555_v51 = vpop.permute.xlu0 %425 }
  0xaa   :  { %v1553_v50 = vpop.permute.xlu1 %429  ;;  %2402 = vst [vmem:[#allocation14_spill] sm:$0xff] %v1555_v51 }
  0xab   :  { %2401 = vst [vmem:[#allocation13_spill] sm:$0xff] %v1553_v50 }
  0xae   :  { %v1571_v59 = vpop.permute.xlu0 %470 }
  0xaf   :  { %v1557_v52 = vpop.permute.xlu1 %466  ;;  %2404 = vst [vmem:[#allocation16_spill] sm:$0xff] %v1571_v59 }
  0xb0   :  { %2403 = vst [vmem:[#allocation15_spill] sm:$0xff] %v1557_v52 }
  0xdb   :  { %v124_v23 = vpop.f32.mrb[0].mxu0 }
  0xdc   :  { %v125_v24 = vadd.f32 %v124_v23, %v1443_v22  ;;  %v126_v25 = vpop.f32.mrb[1].mxu0  ;;  %v168_v23 = vsub.s32 0, %v1593_v18 }
  0xdd   :  { %v127_v27 = vadd.f32 %v126_v25, %v1443_v22  ;;  %v1607_v25 = vld [vmem:[%s2352_s3] sm:$0xff]  ;;  %v291_v22 = vsub.s32 3, %v1593_v18 }
  0xde   :  { %v1446_v26 = vmax.f32 %v125_v24, 0.0 }
  0xdf   :  { %v130_v28 = vpop.f32.mrb[2].mxu0  ;;  %v1453_v30 = vmax.f32 %v127_v27, 0.0  ;;  %v1612_v27 = vld [vmem:[%s2352_s3 + $0x8] sm:$0xff] }
  0xe0   :  { %v132_v29 = vpop.f32.mrb[3].mxu0  ;;  %440 = vrot.lane.b32.xlu0 %v1446_v26, %s1349_s5  ;;  %151 = vrot.lane.b32.xlu1 %v1446_v26, %s1350_s6  ;;  %v131_v32 = vadd.f32 %v130_v28, %v1471_v31 }
  0xe1   :  { %v133_v34 = vadd.f32 %v132_v29, %v1471_v31  ;;  %v209_v29 = vsub.s32 1, %v1593_v18  ;;  %v455_v31 = vsub.s32 7, %v1593_v18 }
  0xe2   :  { %v1478_v33 = vmax.f32 %v131_v32, 0.0  ;;  %v1619_v32 = vrot.slane %v1607_v25, %v168_v23 }
  0xe3   :  { %v1493_v35 = vmax.f32 %v133_v34, 0.0  ;;  %v1622_v34 = vrot.slane %v1612_v27, %v168_v23  ;;  %v1634_v58 = vrot.slane %v1607_v25, %v209_v29  ;;  %v1637_v16 = vrot.slane %v1612_v27, %v209_v29 }
  0xe4   :  { %155 = vrot.lane.b32.xlu0 %v1453_v30, %s1350_s6  ;;  %194 = vrot.lane.b32.xlu1 %v1446_v26, %s1351_s7  ;;  %v147_v29 = vmul.f32 %v1512_v36, %v1446_v26 }
  0xe8   :  { %239 = vrot.lane.b32.xlu0 %v1453_v30, %s1352_s8  ;;  %235 = vrot.lane.b32.xlu1 %v1446_v26, %s1352_s8 }
  0xec   :  { %321 = vrot.lane.b32.xlu0 %v1453_v30, %s1353_s9  ;;  %276 = vrot.lane.b32.xlu1 %v1446_v26, %s1354_s10 }
  0xf0   :  { %403 = vrot.lane.b32.xlu0 %v1453_v30, %s1355_s11  ;;  %317 = vrot.lane.b32.xlu1 %v1446_v26, %s1353_s9 }
  0xf4   :  { %444 = vrot.lane.b32.xlu0 %v1453_v30, %s1349_s5  ;;  %358 = vrot.lane.b32.xlu1 %v1446_v26, %s1356_s12 }
  0xf8   :  { %196 = vrot.lane.b32.xlu0 %v1478_v33, %s1351_s7  ;;  %399 = vrot.lane.b32.xlu1 %v1446_v26, %s1355_s11 }
  0xfc   :  { %278 = vrot.lane.b32.xlu0 %v1478_v33, %s1354_s10  ;;  %198 = vrot.lane.b32.xlu1 %v1453_v30, %s1351_s7 }
 0x100   :  { %360 = vrot.lane.b32.xlu0 %v1478_v33, %s1356_s12  ;;  %280 = vrot.lane.b32.xlu1 %v1453_v30, %s1354_s10 }
 0x104   :  { %200 = vrot.lane.b32.xlu0 %v1493_v35, %s1351_s7  ;;  %362 = vrot.lane.b32.xlu1 %v1453_v30, %s1356_s12 }
 0x108   :  { %282 = vrot.lane.b32.xlu0 %v1493_v35, %s1354_s10  ;;  %153 = vrot.lane.b32.xlu1 %v1478_v33, %s1350_s6 }
 0x10c   :  { %364 = vrot.lane.b32.xlu0 %v1493_v35, %s1356_s12  ;;  %237 = vrot.lane.b32.xlu1 %v1478_v33, %s1352_s8 }
 0x110   :  { %482 = vperm.xlu0 %1333, %v1400_v9   ;;  %319 = vrot.lane.b32.xlu1 %v1478_v33, %s1353_s9 }
 0x114   :  { %401 = vrot.lane.b32.xlu1 %v1478_v33, %s1355_s11 }
 0x118   :  { %442 = vrot.lane.b32.xlu1 %v1478_v33, %s1349_s5 }
 0x11c   :  { %157 = vrot.lane.b32.xlu1 %v1493_v35, %s1350_s6 }
 0x120   :  { %241 = vrot.lane.b32.xlu1 %v1493_v35, %s1352_s8 }
 0x124   :  { %323 = vrot.lane.b32.xlu1 %v1493_v35, %s1353_s9 }
 0x128   :  { %405 = vrot.lane.b32.xlu1 %v1493_v35, %s1355_s11 }
 0x12c   :  { %446 = vrot.lane.b32.xlu1 %v1493_v35, %s1349_s5 }
 0x130   :  { %486 = vperm.xlu1 %1334, %v1411_v11  }
 0x152   :  { %v152_v60 = vpop.permute.xlu1 %151  ;;  %v1573_v61 = vpop.permute.xlu0 %440 }
 0x156   :  { %v195_v62 = vpop.permute.xlu1 %194  ;;  %v156_v0 = vpop.permute.xlu0 %155 }
 0x157   :  { %v162_v54 = vsel %vm161_vm1, %v152_v60, %v156_v0  ;;  %v164_v55 = vsel %vm161_vm1, %v156_v0, %v152_v60 }
 0x158   :  { %v174_v23 = vmul.f32 %v1619_v32, %v164_v55  ;;  %v175_v3 = vmul.f32 %v1622_v34, %v162_v54  ;;  %v1654_v55 = vrot.slane %v1607_v25, %v250_v56  ;;  %v1657_v54 = vrot.slane %v1612_v27, %v250_v56 }
 0x15a   :  { %v236_v63 = vpop.permute.xlu1 %235  ;;  %v240_v2 = vpop.permute.xlu0 %239  ;;  %v186_v26 = vmul.f32 %v1526_v39, %v174_v23  ;;  %v187_v52 = vmul.f32 %v1526_v39, %v175_v3  ;;  %v1681_v23 = vrot.slane %v1612_v27, %v332_v57  ;;  %v1684_v3 = vrot.slane %v1607_v25, %v455_v31 }
 0x15b   :  { %v244_v56 = vsel %vm243_vm3, %v236_v63, %v240_v2  ;;  %v246_v59 = vsel %vm243_vm3, %v240_v2, %v236_v63  ;;  %v1692_v2 = vrot.slane %v1607_v25, %v291_v22  ;;  %v373_v63 = vsub.s32 5, %v1593_v18 }
 0x15c   :  { %2406 = vst [vmem:[#allocation18_spill] sm:$0xff] %v1684_v3  ;;  %v256_v39 = vmul.f32 %v1654_v55, %v246_v59  ;;  %v190_v50 = vadd.f32 %v186_v26, %v147_v29 }
 0x15e   :  { %v1575_v1 = vpop.permute.xlu1 %276  ;;  %v1581_v6 = vpop.permute.xlu0 %321 }
 0x162   :  { %v1577_v4 = vpop.permute.xlu1 %317  ;;  %v1585_v8 = vpop.permute.xlu0 %403 }
 0x166   :  { %v1579_v5 = vpop.permute.xlu1 %358  ;;  %v1589_v15 = vpop.permute.xlu0 %444 }
 0x16a   :  { %v1583_v7 = vpop.permute.xlu1 %399  ;;  %v1595_v19 = vpop.permute.xlu0 %196 }
 0x16e   :  { %v199_v13 = vpop.permute.xlu1 %198  ;;  %v1615_v28 = vpop.permute.xlu0 %278 }
 0x16f   :  { %v203_v11 = vsel %vm202_vm2, %v195_v62, %v199_v13  ;;  %v205_v60 = vsel %vm202_vm2, %v199_v13, %v195_v62  ;;  %v148_v62 = vmul.f32 %v1512_v36, %v1453_v30  ;;  %v1663_v13 = vrot.slane %v1607_v25, %v332_v57 }
 0x170   :  { %v215_v12 = vmul.f32 %v1634_v58, %v205_v60  ;;  %v216_v10 = vmul.f32 %v1637_v16, %v203_v11  ;;  %v149_v36 = vmul.f32 %v1518_v37, %v1478_v33  ;;  %v150_v11 = vmul.f32 %v1518_v37, %v1493_v35 }
 0x171   :  { %v1687_v60 = vrot.slane %v1612_v27, %v455_v31  ;;  %v257_v35 = vmul.f32 %v1657_v54, %v244_v56  ;;  %v191_v51 = vadd.f32 %v187_v52, %v148_v62  ;;  %v1699_v31 = vrot.slane %v1612_v27, %v291_v22 }
 0x172   :  { %v1587_v14 = vpop.permute.xlu1 %280  ;;  %v1645_v0 = vpop.permute.xlu0 %360  ;;  %v227_v57 = vmul.f32 %v1530_v40, %v215_v12  ;;  %v228_v37 = vmul.f32 %v1530_v40, %v216_v10  ;;  %v268_v62 = vmul.f32 %v1539_v43, %v256_v39 }
 0x173   :  { %2407 = vst [vmem:[#allocation19_spill] sm:$0xff] %v1687_v60  ;;  %v285_v22 = vsel %vm284_vm5, %v1575_v1, %v1587_v14  ;;  %v287_v52 = vsel %vm284_vm5, %v1587_v14, %v1575_v1  ;;  %v269_v26 = vmul.f32 %v1539_v43, %v257_v35 }
 0x174   :  { %v231_v56 = vadd.f32 %v227_v57, %v190_v50  ;;  %v297_v1 = vmul.f32 %v1692_v2, %v287_v52  ;;  %v298_v14 = vmul.f32 %v1699_v31, %v285_v22 }
 0x176   :  { %v1591_v17 = vpop.permute.xlu1 %362  ;;  %v201_v33 = vpop.permute.xlu0 %200  ;;  %v309_v22 = vmul.f32 %v1541_v44, %v297_v1  ;;  %v310_v52 = vmul.f32 %v1541_v44, %v298_v14 }
 0x177   :  { %v204_v3 = vsel %vm202_vm2, %v1595_v19, %v201_v33  ;;  %v206_v59 = vsel %vm202_vm2, %v201_v33, %v1595_v19 }
 0x178   :  { %v218_v33 = vmul.f32 %v1637_v16, %v204_v3 }
 0x17a   :  { %v1597_v20 = vpop.permute.xlu1 %153  ;;  %v283_v50 = vpop.permute.xlu0 %282 }
 0x17e   :  { %v1602_v24 = vpop.permute.xlu1 %237 }
 0x182   :  { %v1624_v53 = vpop.permute.xlu1 %319 }
 0x186   :  { %v1647_v9 = vpop.permute.xlu1 %401 }
 0x18a   :  { %v1674_v30 = vpop.permute.xlu1 %442 }
 0x18b   :  { %2405 = vst [vmem:[#allocation17_spill] sm:$0xff] %v1674_v30 }
 0x18e   :  { %v158_v60 = vpop.permute.xlu1 %157 }
 0x18f   :  { %v163_v10 = vsel %vm161_vm1, %v1597_v20, %v158_v60  ;;  %v165_v12 = vsel %vm161_vm1, %v158_v60, %v1597_v20  ;;  %v232_v20 = vadd.f32 %v228_v37, %v191_v51  ;;  %v217_v60 = vmul.f32 %v1634_v58, %v206_v59 }
 0x190   :  { %v176_v19 = vmul.f32 %v1619_v32, %v165_v12  ;;  %v177_v29 = vmul.f32 %v1622_v34, %v163_v10  ;;  %v326_v59 = vsel %vm325_vm4, %v1577_v4, %v1581_v6  ;;  %v328_v10 = vsel %vm325_vm4, %v1581_v6, %v1577_v4 }
 0x191   :  { %v1751_v12 = vrot.slane %v1607_v25, %v373_v63  ;;  %v286_v4 = vsel %vm284_vm5, %v1615_v28, %v283_v50  ;;  %v288_v6 = vsel %vm284_vm5, %v283_v50, %v1615_v28  ;;  %v367_v28 = vsel %vm366_vm6, %v1579_v5, %v1591_v17 }
 0x192   :  { %v188_v40 = vmul.f32 %v1522_v38, %v176_v19  ;;  %v189_v49 = vmul.f32 %v1522_v38, %v177_v29  ;;  %v242_v30 = vpop.permute.xlu1 %241  ;;  %v299_v1 = vmul.f32 %v1692_v2, %v288_v6  ;;  %v300_v14 = vmul.f32 %v1699_v31, %v286_v4 }
 0x193   :  { %v245_v39 = vsel %vm243_vm3, %v1602_v24, %v242_v30  ;;  %v247_v37 = vsel %vm243_vm3, %v242_v30, %v1602_v24  ;;  %v229_v24 = vmul.f32 %v1534_v41, %v217_v60  ;;  %v230_v30 = vmul.f32 %v1534_v41, %v218_v33 }
 0x194   :  { %v192_v51 = vadd.f32 %v188_v40, %v149_v36  ;;  %v193_v3 = vadd.f32 %v189_v49, %v150_v11  ;;  %v258_v35 = vmul.f32 %v1654_v55, %v247_v37  ;;  %v259_v57 = vmul.f32 %v1657_v54, %v245_v39 }
 0x195   :  { %v1754_v36 = vrot.slane %v1612_v27, %v373_v63  ;;  %v273_v40 = vadd.f32 %v269_v26, %v232_v20  ;;  %v272_v49 = vadd.f32 %v268_v62, %v231_v56  ;;  %v338_v26 = vmul.f32 %v1663_v13, %v326_v59 }
 0x196   :  { %v324_v11 = vpop.permute.xlu1 %323  ;;  %v233_v63 = vadd.f32 %v229_v24, %v192_v51  ;;  %v234_v19 = vadd.f32 %v230_v30, %v193_v3  ;;  %v270_v29 = vmul.f32 %v1536_v42, %v258_v35  ;;  %v271_v62 = vmul.f32 %v1536_v42, %v259_v57  ;;  %v365_v57 = vpop.permute.xlu0 %364 }
 0x197   :  { %v339_v56 = vmul.f32 %v1681_v23, %v328_v10  ;;  %v327_v20 = vsel %vm325_vm4, %v1624_v53, %v324_v11  ;;  %v329_v60 = vsel %vm325_vm4, %v324_v11, %v1624_v53  ;;  %v369_v33 = vsel %vm366_vm6, %v1591_v17, %v1579_v5 }
 0x198   :  { %v2408_v37 = vsub.s32 6, %v1593_v18  ;;  %v313_v3 = vadd.f32 %v309_v22, %v272_v49  ;;  %v314_v35 = vadd.f32 %v310_v52, %v273_v40  ;;  %v274_v59 = vadd.f32 %v270_v29, %v233_v63 }
 0x199   :  { %v275_v5 = vadd.f32 %v271_v62, %v234_v19  ;;  %v340_v17 = vmul.f32 %v1663_v13, %v327_v20  ;;  %v341_v10 = vmul.f32 %v1681_v23, %v329_v60  ;;  %v350_v24 = vmul.f32 %v1547_v47, %v338_v26 }
 0x19a   :  { %v406_v39 = vpop.permute.xlu1 %405  ;;  %v1790_v50 = vrot.slane %v1607_v25, %v2408_v37  ;;  %v2409_v53 = vmov %v2408_v37  ;;  %v351_v30 = vmul.f32 %v1547_v47, %v339_v56  ;;  %v379_v25 = vmul.f32 %v1751_v12, %v367_v28  ;;  %v2410_v37 = vld [vmem:[#allocation17_spill] sm:$0xff] }
 0x19b   :  { %v1795_v51 = vrot.slane %v1612_v27, %v2409_v53  ;;  %v380_v18 = vmul.f32 %v1754_v36, %v369_v33  ;;  %v408_v27 = vsel %vm407_vm7, %v1583_v7, %v1585_v8  ;;  %v410_v40 = vsel %vm407_vm7, %v1585_v8, %v1583_v7 }
 0x19c   :  { %v311_v49 = vmul.f32 %v1543_v45, %v299_v1  ;;  %v312_v11 = vmul.f32 %v1543_v45, %v300_v14  ;;  %v355_v22 = vadd.f32 %v351_v30, %v314_v35  ;;  %v354_v52 = vadd.f32 %v350_v24, %v313_v3  ;;  %v2413_v30 = vld [vmem:[#allocation19_spill] sm:$0xff] }
 0x19d   :  { %v368_v4 = vsel %vm366_vm6, %v1645_v0, %v365_v57  ;;  %v370_v6 = vsel %vm366_vm6, %v365_v57, %v1645_v0  ;;  %v352_v29 = vmul.f32 %v1545_v46, %v340_v17  ;;  %v353_v7 = vmul.f32 %v1545_v46, %v341_v10  ;;  %v2412_v10 = vld [vmem:[#allocation18_spill] sm:$0xff] }
 0x19e   :  { %v315_v63 = vadd.f32 %v311_v49, %v274_v59  ;;  %v316_v19 = vadd.f32 %v312_v11, %v275_v5  ;;  %v447_v8 = vpop.permute.xlu1 %446  ;;  %v391_v62 = vmul.f32 %v1549_v48, %v379_v25  ;;  %v392_v26 = vmul.f32 %v1549_v48, %v380_v18  ;;  %v2411_v59 = vld [vmem:[#allocation12_spill] sm:$0xff] }
 0x19f   :  { %v409_v56 = vsel %vm407_vm7, %v1647_v9, %v406_v39  ;;  %v411_v20 = vsel %vm407_vm7, %v406_v39, %v1647_v9  ;;  %v449_v0 = vsel %vm448_vm8, %v1573_v61, %v1589_v15  ;;  %v451_v60 = vsel %vm448_vm8, %v1589_v15, %v1573_v61 }
 0x1a0   :  { %v381_v28 = vmul.f32 %v1751_v12, %v368_v4  ;;  %v382_v33 = vmul.f32 %v1754_v36, %v370_v6  ;;  %v420_v1 = vmul.f32 %v1790_v50, %v408_v27  ;;  %v421_v14 = vmul.f32 %v1795_v51, %v410_v40  ;;  %v2414_v40 = vld [vmem:[#allocation14_spill] sm:$0xff]  ;;  %v2415_v6 = vld [vmem:[#allocation13_spill] sm:$0xff] }
 0x1a1   :  { %v450_v9 = vsel %vm448_vm8, %v2410_v37, %v447_v8  ;;  %v452_v39 = vsel %vm448_vm8, %v447_v8, %v2410_v37  ;;  %v356_v53 = vadd.f32 %v352_v29, %v315_v63  ;;  %v357_v3 = vadd.f32 %v353_v7, %v316_v19  ;;  %v2416_v19 = vld [vmem:[#allocation16_spill] sm:$0xff] }
 0x1a2   :  { %v422_v61 = vmul.f32 %v1790_v50, %v409_v56  ;;  %v423_v15 = vmul.f32 %v1795_v51, %v411_v20  ;;  %v395_v35 = vadd.f32 %v391_v62, %v354_v52  ;;  %v396_v57 = vadd.f32 %v392_v26, %v355_v22  ;;  %v2417_v26 = vld [vmem:[#allocation15_spill] sm:$0xff] }
 0x1a3   :  { %v393_v5 = vmul.f32 %v2411_v59, %v381_v28  ;;  %v394_v17 = vmul.f32 %v2411_v59, %v382_v33  ;;  %v463_v24 = vmul.f32 %v2412_v10, %v450_v9  ;;  %v464_v25 = vmul.f32 %v2413_v30, %v452_v39  ;;  %v1863_v28 = vpop.permute.xlu0 %482  ;;  %v1249_v39 = vld [vmem:[%s2349_s0 + $0x68] sm:$0xff] }
 0x1a4   :  { %v461_v18 = vmul.f32 %v2412_v10, %v449_v0  ;;  %v462_v27 = vmul.f32 %v2413_v30, %v451_v60  ;;  %v432_v49 = vmul.f32 %v2414_v40, %v420_v1  ;;  %v433_v11 = vmul.f32 %v2414_v40, %v421_v14  ;;  %2418 = vst [vmem:[#allocation17_spill] sm:$0xff] %v1863_v28 }
 0x1a5   :  { %v397_v4 = vadd.f32 %v393_v5, %v356_v53  ;;  %v434_v52 = vmul.f32 %v2415_v6, %v422_v61  ;;  %v435_v22 = vmul.f32 %v2415_v6, %v423_v15  ;;  %v398_v63 = vadd.f32 %v394_v17, %v357_v3  ;;  %v1251_v53 = vld [vmem:[%s2349_s0 + $0x78] sm:$0xff] }
 0x1a6   :  { %v475_v29 = vmul.f32 %v2416_v19, %v463_v24  ;;  %v476_v7 = vmul.f32 %v2416_v19, %v464_v25  ;;  %v437_v8 = vadd.f32 %v433_v11, %v396_v57  ;;  %v436_v62 = vadd.f32 %v432_v49, %v395_v35  ;;  %v1248_v24 = vld [vmem:[%s2349_s0 + $0x60] sm:$0xff]  ;;  %v1250_v25 = vld [vmem:[%s2349_s0 + $0x70] sm:$0xff]  ;;  %v1894_v11 = vld [vmem:[%s2351_s1 + $0x18] sm:$0xff] }
 0x1a7   :  { %v473_v56 = vmul.f32 %v2417_v26, %v461_v18  ;;  %v474_v20 = vmul.f32 %v2417_v26, %v462_v27  ;;  %v438_v0 = vadd.f32 %v434_v52, %v397_v4  ;;  %v439_v60 = vadd.f32 %v435_v22, %v398_v63  ;;  %v1886_v18 = vld [vmem:[%s2351_s1 + $0x10] sm:$0xff]  ;;  %2422 = vst [vmem:[#allocation19_spill] sm:$0xff] %v1894_v11  ;;  %v1902_v4 = vld [vmem:[%s2351_s1 + $0x20] sm:$0xff]  ;;  %v1910_v52 = vld [vmem:[%s2351_s1 + $0x28] sm:$0xff] }
 0x1a8   :  { %v1282_v17 = vpack.c.bf16 %v1251_v53, %v1249_v39  ;;  %2420 = vst [vmem:[#allocation18_spill] sm:$0xff] %v1886_v18  ;;  %v1284_v27 = vpack.c.bf16 %v1250_v25, %v1248_v24  ;;  %v2421_v49 = vmov 0.0   ;;  %2423 = vst [vmem:[#allocation14_spill] sm:$0xff] %v1902_v4  ;;  %v2425_v22 = vld [vmem:[#allocation3_spill] sm:$0xff]  ;;  %v2426_v63 = vld [vmem:[#allocation5_spill] sm:$0xff] }
 0x1a9   :  { %v478_v33 = vadd.f32 %v474_v20, %v437_v8  ;;  %v480_v1 = vadd.f32 %v476_v7, %v439_v60  ;;  %v477_v14 = vadd.f32 %v473_v56, %v436_v62  ;;  %v479_v37 = vadd.f32 %v475_v29, %v438_v0  ;;  %2424 = vst [vmem:[#allocation13_spill] sm:$0xff] %v1910_v52  ;;  %v1924_v29 = vld [vmem:[%s2351_s1 + $0x30] sm:$0xff]  ;;  %v1932_v7 = vld [vmem:[%s2351_s1 + $0x38] sm:$0xff]  ;;  %v1940_v8 = vld [vmem:[%s2351_s1 + $0x40] sm:$0xff] }
 0x1aa   :  { %1240 = vmatmul.mubr.msk.f32.vlgmr.msra.gmra.mrb[4].mxu0 %vm51_vm0, %v1924_v29  ;;  %v1948_v62 = vld [vmem:[%s2351_s1 + $0x48] sm:$0xff]  ;;  %v1357_v56 = vmov 11  }
 0x1ab   :  { %v490_v3 = vadd.f32 %v1863_v28, %v478_v33  ;;  %v489_v15 = vadd.f32 %v1863_v28, %v477_v14  ;;  %702 = vmatprep.mubr.f32.mxu0 %v2421_v49  ;;  %1335 = vset.pattern.permute.xlu1 %v1357_v56  ;;  %v2452_v21 = vld [vmem:[#allocation17_spill] sm:$0xff] }
 0x1ac   :  { %1336 = vset.pattern.permute.xlu0 %v1357_v56 }
 0x1ae   :  { %1241 = vmatmul.mubr.msk.f32.gmra.mrb[6].mxu0 %vm51_vm0, %v1932_v7 }
 0x1af   :  { %v1865_v9 = vpop.permute.xlu1 %486  ;;  %708 = vmatprep.mubr.f32.mxu0 %v2421_v49 }
 0x1b0   :  { %2419 = vst [vmem:[#allocation12_spill] sm:$0xff] %v1865_v9  ;;  %v492_v61 = vadd.f32 %v1865_v9, %v480_v1  ;;  %v491_v35 = vadd.f32 %v1865_v9, %v479_v37 }
 0x1b2   :  { %v1274_v57 = vpack.c.bf16 %v492_v61, %v490_v3  ;;  %v1276_v5 = vpack.c.bf16 %v491_v35, %v489_v15  ;;  %1242 = vmatmul.mubr.msk.f32.gmra.mrb[8].mxu0 %vm51_vm0, %v1940_v8  ;;  %v2435_v3 = vld [vmem:[#allocation6_spill] sm:$0xff] }
 0x1b3   :  { %714 = vmatprep.mubr.f32.mxu0 %v2421_v49 }
 0x1b4   :  { %1275 = vmatprep.subr.bf16.mxu1 %v1274_v57 }
 0x1b5   :  { %1277 = vmatpush1.bf16.msra.mxu1 %v1276_v5  ;;  %v2436_v5 = vld [vmem:[#allocation7_spill] sm:$0xff] }
 0x1b6   :  { %1283 = vmatprep.subr.bf16.mxu1 %v1282_v17  ;;  %1243 = vmatmul.mubr.msk.f32.gmra.mrb[10].mxu0 %vm51_vm0, %v1948_v62 }
 0x1b7   :  { %1091 = vmatprep.mubr.f32.mxu0 %v2421_v49 }
 0x1b8   :  { %1236 = vmatmul.mubr.msk.f32.vlgmr.msra.gmra.mrb[0].mxu1 %vm51_vm0, %v1886_v18 }
 0x1b9   :  { %593 = vmatprep.mubr.f32.mxu1 %v2421_v49  ;;  %1285 = vmatpush1.bf16.msra.mxu1 %v1284_v27 }
 0x1bc   :  { %1237 = vmatmul.mubr.msk.f32.gmra.mrb[2].mxu1 %vm51_vm0, %v1894_v11 }
 0x1bd   :  { %599 = vmatprep.mubr.f32.mxu1 %v2421_v49 }
 0x1c0   :  { %1238 = vmatmul.mubr.msk.f32.gmra.mrb[4].mxu1 %vm51_vm0, %v1902_v4 }
 0x1c1   :  { %605 = vmatprep.mubr.f32.mxu1 %v2421_v49 }
 0x1c4   :  { %1239 = vmatmul.mubr.msk.f32.gmra.mrb[6].mxu1 %vm51_vm0, %v1910_v52 }
 0x1c5   :  { %810 = vmatprep.mubr.f32.mxu1 %v2421_v49 }
 0x1c8   :  { %1252 = vmatmul.mubr.msk.f32.vlgmr.msra.gmra.mrb[8].mxu1 %vm51_vm0, %v2425_v22 }
 0x1c9   :  { %816 = vmatprep.mubr.f32.mxu1 %v2421_v49 }
 0x1cc   :  { %1253 = vmatmul.mubr.msk.f32.gmra.mrb[10].mxu1 %vm51_vm0, %v2426_v63 }
 0x1cd   :  { %1188 = vmatprep.mubr.f32.mxu1 %v2421_v49 }
 0x28b   :  { %v1953_v20 = vpop.f32.mrb[0].mxu1 }
 0x28c   :  { %2427 = vst [vmem:[#allocation15_spill] sm:$0xff] %v1953_v20  ;;  %v1955_v0 = vpop.f32.mrb[1].mxu1 }
 0x28d   :  { %2428 = vst [vmem:[#allocation3_spill] sm:$0xff] %v1955_v0 }
 0x28f   :  { %v1957_v60 = vpop.f32.mrb[2].mxu1 }
 0x290   :  { %2429 = vst [vmem:[#allocation5_spill] sm:$0xff] %v1957_v60  ;;  %v1959_v33 = vpop.f32.mrb[3].mxu1 }
 0x291   :  { %2430 = vst [vmem:[#allocation20_spill] sm:$0xff] %v1959_v33  ;;  %v2447_v33 = vld [vmem:[#allocation10_spill] sm:$0xff] }
 0x293   :  { %v1961_v1 = vpop.f32.mrb[4].mxu1 }
 0x294   :  { %2431 = vst [vmem:[#allocation21_spill] sm:$0xff] %v1961_v1  ;;  %v1963_v14 = vpop.f32.mrb[5].mxu1 }
 0x295   :  { %2432 = vst [vmem:[#allocation22_spill] sm:$0xff] %v1963_v14 }
 0x297   :  { %v1965_v37 = vpop.f32.mrb[6].mxu1 }
 0x298   :  { %2433 = vst [vmem:[#allocation23_spill] sm:$0xff] %v1965_v37  ;;  %v1967_v39 = vpop.f32.mrb[7].mxu1 }
 0x299   :  { %2434 = vst [vmem:[#allocation24_spill] sm:$0xff] %v1967_v39 }
 0x29b   :  { %v812_v53 = vpop.f32.mrb[8].mxu1 }
 0x29c   :  { %v813_v61 = vadd.f32 %v812_v53, %v2435_v3  ;;  %v814_v15 = vpop.f32.mrb[9].mxu1  ;;  %v2437_v53 = vld [vmem:[#allocation2_spill] sm:$0xff] }
 0x29d   :  { %v815_v27 = vadd.f32 %v814_v15, %v2435_v3  ;;  %v1245_v3 = vld [vmem:[%s2349_s0 + $0x48] sm:$0xff]  ;;  %v29_v15 = vld [vmem:[%s2350_s2 + $0x10] sm:$0xff] }
 0x29e   :  { %v1970_v35 = vmax.f32 %v813_v61, 0.0  ;;  %v1247_v61 = vld [vmem:[%s2349_s0 + $0x58] sm:$0xff] }
 0x29f   :  { %v818_v57 = vpop.f32.mrb[10].mxu1  ;;  %v2006_v22 = vmax.f32 %v815_v27, 0.0 }
 0x2a0   :  { %v819_v17 = vadd.f32 %v818_v57, %v2436_v5  ;;  %v820_v24 = vpop.f32.mrb[11].mxu1  ;;  %831 = vrot.lane.b32.xlu1 %v1970_v35, %s1350_s6  ;;  %v1290_v57 = vpack.c.bf16 %v1247_v61, %v1245_v3 }
 0x2a1   :  { %v821_v63 = vadd.f32 %v820_v24, %v2436_v5  ;;  %v1244_v5 = vld [vmem:[%s2349_s0 + $0x40] sm:$0xff]  ;;  %v2061_v24 = vpop.f32.mrb[4].mxu0 }
 0x2a2   :  { %v1975_v25 = vmax.f32 %v819_v17, 0.0  ;;  %v1246_v17 = vld [vmem:[%s2349_s0 + $0x50] sm:$0xff]  ;;  %2438 = vst [vmem:[#allocation6_spill] sm:$0xff] %v2061_v24  ;;  %1291 = vmatprep.subr.bf16.mxu1 %v1290_v57  ;;  %v2067_v3 = vpop.f32.mrb[5].mxu0 }
 0x2a3   :  { %v2013_v56 = vmax.f32 %v821_v63, 0.0  ;;  %v1292_v27 = vpack.c.bf16 %v1246_v17, %v1244_v5  ;;  %v2439_v63 = vld [vmem:[#allocation4_spill] sm:$0xff]  ;;  %2440 = vst [vmem:[#allocation7_spill] sm:$0xff] %v2067_v3  ;;  %v2069_v61 = vpop.f32.mrb[6].mxu0 }
 0x2a4   :  { %833 = vrot.lane.b32.xlu0 %v1975_v25, %s1350_s6  ;;  %855 = vrot.lane.b32.xlu1 %v1970_v35, %s1351_s7  ;;  %2441 = vst [vmem:[#allocation2_spill] sm:$0xff] %v2069_v61  ;;  %v2071_v52 = vpop.f32.mrb[7].mxu0 }
 0x2a5   :  { %1293 = vmatpush1.bf16.msra.mxu1 %v1292_v27  ;;  %2442 = vst [vmem:[#allocation4_spill] sm:$0xff] %v2071_v52  ;;  %v2073_v4 = vpop.f32.mrb[8].mxu0 }
 0x2a6   :  { %2443 = vst [vmem:[#allocation25_spill] sm:$0xff] %v2073_v4  ;;  %v2077_v57 = vpop.f32.mrb[9].mxu0 }
 0x2a7   :  { %2444 = vst [vmem:[#allocation26_spill] sm:$0xff] %v2077_v57 }
 0x2a8   :  { %857 = vrot.lane.b32.xlu0 %v1975_v25, %s1351_s7  ;;  %879 = vrot.lane.b32.xlu1 %v1970_v35, %s1352_s8 }
 0x2a9   :  { %1258 = vmatmul.mubr.msk.f32.vlgmr.msra.gmra.mrb[12].mxu1 %vm51_vm0, %v1924_v29 }
 0x2aa   :  { %1194 = vmatprep.mubr.f32.mxu1 %v2421_v49 }
 0x2ac   :  { %881 = vrot.lane.b32.xlu0 %v1975_v25, %s1352_s8  ;;  %903 = vrot.lane.b32.xlu1 %v1970_v35, %s1354_s10 }
 0x2ad   :  { %1259 = vmatmul.mubr.msk.f32.gmra.mrb[14].mxu1 %vm51_vm0, %v1932_v7 }
 0x2ae   :  { %1200 = vmatprep.mubr.f32.mxu1 %v2421_v49 }
 0x2b0   :  { %905 = vrot.lane.b32.xlu0 %v1975_v25, %s1354_s10  ;;  %927 = vrot.lane.b32.xlu1 %v1970_v35, %s1353_s9 }
 0x2b1   :  { %1260 = vmatmul.mubr.msk.f32.gmra.mrb[16].mxu1 %vm51_vm0, %v1940_v8 }
 0x2b2   :  { %1206 = vmatprep.mubr.f32.mxu1 %v2421_v49 }
 0x2b4   :  { %929 = vrot.lane.b32.xlu0 %v1975_v25, %s1353_s9  ;;  %951 = vrot.lane.b32.xlu1 %v1970_v35, %s1356_s12 }
 0x2b5   :  { %1261 = vmatmul.mubr.msk.f32.gmra.mrb[18].mxu1 %vm51_vm0, %v1948_v62 }
 0x2b8   :  { %953 = vrot.lane.b32.xlu0 %v1975_v25, %s1356_s12  ;;  %975 = vrot.lane.b32.xlu1 %v1970_v35, %s1355_s11 }
 0x2bc   :  { %977 = vrot.lane.b32.xlu0 %v1975_v25, %s1355_s11  ;;  %999 = vrot.lane.b32.xlu1 %v1970_v35, %s1349_s5 }
 0x2c0   :  { %1001 = vrot.lane.b32.xlu0 %v1975_v25, %s1349_s5  ;;  %835 = vrot.lane.b32.xlu1 %v2006_v22, %s1350_s6 }
 0x2c4   :  { %837 = vrot.lane.b32.xlu0 %v2013_v56, %s1350_s6  ;;  %859 = vrot.lane.b32.xlu1 %v2006_v22, %s1351_s7 }
 0x2c8   :  { %861 = vrot.lane.b32.xlu0 %v2013_v56, %s1351_s7  ;;  %883 = vrot.lane.b32.xlu1 %v2006_v22, %s1352_s8 }
 0x2cc   :  { %885 = vrot.lane.b32.xlu0 %v2013_v56, %s1352_s8  ;;  %907 = vrot.lane.b32.xlu1 %v2006_v22, %s1354_s10 }
 0x2d0   :  { %909 = vrot.lane.b32.xlu0 %v2013_v56, %s1354_s10  ;;  %931 = vrot.lane.b32.xlu1 %v2006_v22, %s1353_s9 }
 0x2d4   :  { %933 = vrot.lane.b32.xlu0 %v2013_v56, %s1353_s9  ;;  %955 = vrot.lane.b32.xlu1 %v2006_v22, %s1356_s12 }
 0x2d8   :  { %957 = vrot.lane.b32.xlu0 %v2013_v56, %s1356_s12  ;;  %979 = vrot.lane.b32.xlu1 %v2006_v22, %s1355_s11 }
 0x2dc   :  { %981 = vrot.lane.b32.xlu0 %v2013_v56, %s1355_s11  ;;  %1003 = vrot.lane.b32.xlu1 %v2006_v22, %s1349_s5 }
 0x2e0   :  { %1005 = vrot.lane.b32.xlu0 %v2013_v56, %s1349_s5  ;;  %494 = vperm.xlu1 %1335, %v2437_v53   ;;  %v30_v53 = vld [vmem:[%s2350_s2 + $0x18] sm:$0xff] }
 0x2e4   :  { %498 = vperm.xlu0 %1336, %v2439_v63   ;;  %503 = vperm.xlu1 %1335, %v29_v15   ;;  %v2080_v15 = vpop.f32.mrb[10].mxu0 }
 0x2e5   :  { %2445 = vst [vmem:[#allocation27_spill] sm:$0xff] %v2080_v15  ;;  %v2084_v5 = vpop.f32.mrb[11].mxu0 }
 0x2e6   :  { %2446 = vst [vmem:[#allocation28_spill] sm:$0xff] %v2084_v5 }
 0x2e8   :  { %508 = vperm.xlu1 %1335, %v30_v53  }
 0x312   :  { %v832_v29 = vpop.permute.xlu1 %831 }
 0x316   :  { %v834_v17 = vpop.permute.xlu0 %833  ;;  %v856_v27 = vpop.permute.xlu1 %855 }
 0x31a   :  { %v858_v63 = vpop.permute.xlu0 %857  ;;  %v880_v53 = vpop.permute.xlu1 %879 }
 0x31e   :  { %v882_v15 = vpop.permute.xlu0 %881  ;;  %v904_v57 = vpop.permute.xlu1 %903 }
 0x322   :  { %v2092_v7 = vpop.permute.xlu0 %905  ;;  %v2094_v5 = vpop.permute.xlu1 %927 }
 0x326   :  { %v2096_v4 = vpop.permute.xlu0 %929  ;;  %v2098_v11 = vpop.permute.xlu1 %951 }
 0x32a   :  { %v2100_v8 = vpop.permute.xlu0 %953  ;;  %v2102_v39 = vpop.permute.xlu1 %975 }
 0x32e   :  { %v2104_v62 = vpop.permute.xlu0 %977  ;;  %v2106_v37 = vpop.permute.xlu1 %999 }
 0x332   :  { %v2108_v52 = vpop.permute.xlu0 %1001  ;;  %v836_v61 = vpop.permute.xlu1 %835 }
 0x333   :  { %v839_v49 = vsel %vm161_vm1, %v832_v29, %v836_v61  ;;  %v841_v14 = vsel %vm161_vm1, %v836_v61, %v832_v29  ;;  %v2448_v61 = vld [vmem:[#allocation8_spill] sm:$0xff] }
 0x334   :  { %v843_v1 = vmul.f32 %v841_v14, %v1619_v32  ;;  %v844_v18 = vmul.f32 %v839_v49, %v1622_v34 }
 0x336   :  { %v847_v60 = vmul.f32 %v843_v1, %v2447_v33  ;;  %v848_v3 = vmul.f32 %v844_v18, %v2447_v33  ;;  %v838_v24 = vpop.permute.xlu0 %837  ;;  %v860_v0 = vpop.permute.xlu1 %859  ;;  %v828_v18 = vmul.f32 %v2006_v22, %v2448_v61  ;;  %v827_v33 = vmul.f32 %v1970_v35, %v2448_v61  ;;  %v2450_v61 = vld [vmem:[#allocation11_spill] sm:$0xff] }
 0x337   :  { %v840_v20 = vsel %vm161_vm1, %v834_v17, %v838_v24  ;;  %v842_v9 = vsel %vm161_vm1, %v838_v24, %v834_v17  ;;  %v863_v28 = vsel %vm202_vm2, %v856_v27, %v860_v0  ;;  %v865_v14 = vsel %vm202_vm2, %v860_v0, %v856_v27  ;;  %v2449_v17 = vld [vmem:[#allocation9_spill] sm:$0xff] }
 0x338   :  { %v845_v49 = vmul.f32 %v842_v9, %v1619_v32  ;;  %v846_v1 = vmul.f32 %v840_v20, %v1622_v34  ;;  %v867_v29 = vmul.f32 %v865_v14, %v1634_v58  ;;  %v868_v24 = vmul.f32 %v863_v28, %v1637_v16 }
 0x339   :  { %v830_v19 = vmul.f32 %v2013_v56, %v2449_v17  ;;  %v829_v0 = vmul.f32 %v1975_v25, %v2449_v17  ;;  %v851_v9 = vadd.f32 %v847_v60, %v827_v33  ;;  %v852_v34 = vadd.f32 %v848_v3, %v828_v18 }
 0x33a   :  { %v862_v27 = vpop.permute.xlu0 %861  ;;  %v884_v32 = vpop.permute.xlu1 %883  ;;  %v849_v22 = vmul.f32 %v845_v49, %v1522_v38  ;;  %v850_v28 = vmul.f32 %v846_v1, %v1522_v38  ;;  %v871_v25 = vmul.f32 %v867_v29, %v2450_v61  ;;  %v872_v17 = vmul.f32 %v868_v24, %v2450_v61 }
 0x33b   :  { %v864_v20 = vsel %vm202_vm2, %v858_v63, %v862_v27  ;;  %v866_v35 = vsel %vm202_vm2, %v862_v27, %v858_v63  ;;  %v887_v60 = vsel %vm243_vm3, %v880_v53, %v884_v32  ;;  %v889_v3 = vsel %vm243_vm3, %v884_v32, %v880_v53 }
 0x33c   :  { %v869_v14 = vmul.f32 %v866_v35, %v1634_v58  ;;  %v870_v56 = vmul.f32 %v864_v20, %v1637_v16  ;;  %v891_v38 = vmul.f32 %v889_v3, %v1654_v55  ;;  %v892_v58 = vmul.f32 %v887_v60, %v1657_v54 }
 0x33d   :  { %v853_v24 = vadd.f32 %v849_v22, %v829_v0  ;;  %v876_v61 = vadd.f32 %v872_v17, %v852_v34 }
 0x33e   :  { %v873_v63 = vmul.f32 %v869_v14, %v1534_v41  ;;  %v874_v49 = vmul.f32 %v870_v56, %v1534_v41  ;;  %v886_v1 = vpop.permute.xlu0 %885  ;;  %v908_v16 = vpop.permute.xlu1 %907  ;;  %v854_v41 = vadd.f32 %v850_v28, %v830_v19  ;;  %v895_v27 = vmul.f32 %v891_v38, %v1539_v43 }
 0x33f   :  { %v888_v18 = vsel %vm243_vm3, %v882_v15, %v886_v1  ;;  %v890_v33 = vsel %vm243_vm3, %v886_v1, %v882_v15  ;;  %v911_v29 = vsel %vm284_vm5, %v904_v57, %v908_v16  ;;  %v913_v53 = vsel %vm284_vm5, %v908_v16, %v904_v57 }
 0x340   :  { %v896_v32 = vmul.f32 %v892_v58, %v1539_v43  ;;  %v893_v20 = vmul.f32 %v890_v33, %v1654_v55  ;;  %v894_v35 = vmul.f32 %v888_v18, %v1657_v54  ;;  %v915_v14 = vmul.f32 %v913_v53, %v1692_v2 }
 0x341   :  { %v916_v15 = vmul.f32 %v911_v29, %v1699_v31  ;;  %v875_v56 = vadd.f32 %v871_v25, %v851_v9  ;;  %v877_v1 = vadd.f32 %v873_v63, %v853_v24  ;;  %v878_v57 = vadd.f32 %v874_v49, %v854_v41 }
 0x342   :  { %v910_v60 = vpop.permute.xlu0 %909  ;;  %v932_v3 = vpop.permute.xlu1 %931  ;;  %v897_v19 = vmul.f32 %v893_v20, %v1536_v42  ;;  %v898_v0 = vmul.f32 %v894_v35, %v1536_v42  ;;  %v900_v22 = vadd.f32 %v896_v32, %v876_v61  ;;  %v919_v42 = vmul.f32 %v915_v14, %v1541_v44 }
 0x343   :  { %v912_v43 = vsel %vm284_vm5, %v2092_v7, %v910_v60  ;;  %v914_v55 = vsel %vm284_vm5, %v910_v60, %v2092_v7  ;;  %v935_v54 = vsel %vm325_vm4, %v2094_v5, %v932_v3  ;;  %v937_v9 = vsel %vm325_vm4, %v932_v3, %v2094_v5 }
 0x344   :  { %v899_v34 = vadd.f32 %v895_v27, %v875_v56  ;;  %v920_v28 = vmul.f32 %v916_v15, %v1541_v44  ;;  %v917_v25 = vmul.f32 %v914_v55, %v1692_v2  ;;  %v918_v17 = vmul.f32 %v912_v43, %v1699_v31 }
 0x345   :  { %v939_v7 = vmul.f32 %v935_v54, %v1663_v13  ;;  %v940_v63 = vmul.f32 %v937_v9, %v1681_v23  ;;  %v901_v31 = vadd.f32 %v897_v19, %v877_v1  ;;  %v902_v16 = vadd.f32 %v898_v0, %v878_v57 }
 0x346   :  { %v934_v49 = vpop.permute.xlu0 %933  ;;  %v956_v38 = vpop.permute.xlu1 %955  ;;  %v921_v18 = vmul.f32 %v917_v25, %v1543_v45  ;;  %v922_v33 = vmul.f32 %v918_v17, %v1543_v45  ;;  %v923_v41 = vadd.f32 %v919_v42, %v899_v34  ;;  %v924_v27 = vadd.f32 %v920_v28, %v900_v22 }
 0x347   :  { %v936_v5 = vsel %vm325_vm4, %v2096_v4, %v934_v49  ;;  %v938_v58 = vsel %vm325_vm4, %v934_v49, %v2096_v4  ;;  %v959_v44 = vsel %vm366_vm6, %v2098_v11, %v956_v38  ;;  %v961_v2 = vsel %vm366_vm6, %v956_v38, %v2098_v11 }
 0x348   :  { %v941_v29 = vmul.f32 %v936_v5, %v1663_v13  ;;  %v942_v53 = vmul.f32 %v938_v58, %v1681_v23  ;;  %v963_v4 = vmul.f32 %v959_v44, %v1751_v12  ;;  %v964_v24 = vmul.f32 %v961_v2, %v1754_v36 }
 0x349   :  { %v925_v35 = vadd.f32 %v921_v18, %v901_v31  ;;  %v926_v11 = vadd.f32 %v922_v33, %v902_v16  ;;  %v943_v14 = vmul.f32 %v939_v7, %v1547_v47  ;;  %v944_v15 = vmul.f32 %v940_v63, %v1547_v47 }
 0x34a   :  { %v958_v32 = vpop.permute.xlu0 %957  ;;  %v980_v20 = vpop.permute.xlu1 %979  ;;  %v945_v61 = vmul.f32 %v941_v29, %v1545_v46  ;;  %v946_v47 = vmul.f32 %v942_v53, %v1545_v46  ;;  %v967_v60 = vmul.f32 %v963_v4, %v1549_v48  ;;  %v968_v3 = vmul.f32 %v964_v24, %v1549_v48  ;;  %v2451_v53 = vld [vmem:[#allocation16_spill] sm:$0xff] }
 0x34b   :  { %v960_v45 = vsel %vm366_vm6, %v2100_v8, %v958_v32  ;;  %v962_v13 = vsel %vm366_vm6, %v958_v32, %v2100_v8  ;;  %v983_v23 = vsel %vm407_vm7, %v2102_v39, %v980_v20  ;;  %v985_v56 = vsel %vm407_vm7, %v980_v20, %v2102_v39  ;;  %v2453_v32 = vld [vmem:[#allocation12_spill] sm:$0xff] }
 0x34c   :  { %v965_v1 = vmul.f32 %v960_v45, %v1751_v12  ;;  %v966_v8 = vmul.f32 %v962_v13, %v1754_v36  ;;  %v987_v57 = vmul.f32 %v983_v23, %v1790_v50  ;;  %v988_v19 = vmul.f32 %v985_v56, %v1795_v51  ;;  %v2455_v13 = vld [vmem:[#allocation3_spill] sm:$0xff] }
 0x34d   :  { %v947_v36 = vadd.f32 %v943_v14, %v923_v41  ;;  %v948_v55 = vadd.f32 %v944_v15, %v924_v27  ;;  %v949_v28 = vadd.f32 %v945_v61, %v925_v35  ;;  %v950_v25 = vadd.f32 %v946_v47, %v926_v11  ;;  %v2454_v15 = vld [vmem:[#allocation15_spill] sm:$0xff] }
 0x34e   :  { %v982_v0 = vpop.permute.xlu0 %981  ;;  %v1004_v43 = vpop.permute.xlu1 %1003  ;;  %v969_v54 = vmul.f32 %v965_v1, %v2411_v59  ;;  %v970_v9 = vmul.f32 %v966_v8, %v2411_v59  ;;  %v991_v17 = vmul.f32 %v987_v57, %v2414_v40  ;;  %v2457_v8 = vld [vmem:[#allocation7_spill] sm:$0xff] }
 0x34f   :  { %v984_v39 = vsel %vm407_vm7, %v2104_v62, %v982_v0  ;;  %v986_v46 = vsel %vm407_vm7, %v982_v0, %v2104_v62  ;;  %v1007_v48 = vsel %vm448_vm8, %v2106_v37, %v1004_v43  ;;  %v1009_v12 = vsel %vm448_vm8, %v1004_v43, %v2106_v37  ;;  %v2459_v43 = vld [vmem:[#allocation20_spill] sm:$0xff] }
 0x350   :  { %v989_v34 = vmul.f32 %v984_v39, %v1790_v50  ;;  %v990_v22 = vmul.f32 %v986_v46, %v1795_v51  ;;  %v1011_v62 = vmul.f32 %v1007_v48, %v2412_v10  ;;  %v1012_v42 = vmul.f32 %v1009_v12, %v2413_v30  ;;  %v2460_v46 = vld [vmem:[#allocation18_spill] sm:$0xff]  ;;  %v2461_v48 = vld [vmem:[#allocation21_spill] sm:$0xff] }
 0x351   :  { %v992_v37 = vmul.f32 %v988_v19, %v2414_v40  ;;  %v971_v63 = vadd.f32 %v967_v60, %v947_v36  ;;  %v972_v49 = vadd.f32 %v968_v3, %v948_v55  ;;  %v973_v40 = vadd.f32 %v969_v54, %v949_v28  ;;  %v2456_v3 = vld [vmem:[#allocation6_spill] sm:$0xff]  ;;  %v2458_v19 = vld [vmem:[#allocation5_spill] sm:$0xff] }
 0x352   :  { %v1006_v7 = vpop.permute.xlu0 %1005  ;;  %v993_v38 = vmul.f32 %v989_v34, %v2415_v6  ;;  %v994_v59 = vmul.f32 %v990_v22, %v2415_v6  ;;  %v1015_v50 = vmul.f32 %v1011_v62, %v2417_v26  ;;  %v1016_v51 = vmul.f32 %v1012_v42, %v2417_v26  ;;  %v2462_v36 = vld [vmem:[#allocation22_spill] sm:$0xff] }
 0x353   :  { %v1008_v5 = vsel %vm448_vm8, %v2108_v52, %v1006_v7  ;;  %v1010_v58 = vsel %vm448_vm8, %v1006_v7, %v2108_v52  ;;  %v974_v44 = vadd.f32 %v970_v9, %v950_v25  ;;  %v995_v2 = vadd.f32 %v991_v17, %v971_v63  ;;  %v2464_v28 = vld [vmem:[#allocation2_spill] sm:$0xff]  ;;  %v2465_v17 = vld [vmem:[#allocation4_spill] sm:$0xff]  ;;  %v2466_v7 = vld [vmem:[#allocation23_spill] sm:$0xff] }
 0x354   :  { %v996_v31 = vadd.f32 %v992_v37, %v972_v49  ;;  %v1013_v16 = vmul.f32 %v1008_v5, %v2412_v10  ;;  %v1014_v6 = vmul.f32 %v1010_v58, %v2413_v30  ;;  %v997_v18 = vadd.f32 %v993_v38, %v973_v40  ;;  %v2467_v49 = vld [vmem:[#allocation24_spill] sm:$0xff]  ;;  %v2470_v5 = vld [vmem:[#allocation26_spill] sm:$0xff] }
 0x355   :  { %v998_v33 = vadd.f32 %v994_v59, %v974_v44  ;;  %v1019_v29 = vadd.f32 %v1015_v50, %v995_v2  ;;  %v2463_v54 = vmov 0.0   ;;  %v2468_v59 = vld [vmem:[#allocation19_spill] sm:$0xff]  ;;  %v2469_v50 = vld [vmem:[#allocation25_spill] sm:$0xff] }
 0x356   :  { %v1020_v26 = vadd.f32 %v1016_v51, %v996_v31  ;;  %v1017_v4 = vmul.f32 %v1013_v16, %v2451_v53  ;;  %v1018_v24 = vmul.f32 %v1014_v6, %v2451_v53  ;;  %v2471_v2 = vld [vmem:[#allocation27_spill] sm:$0xff]  ;;  %v2472_v16 = vld [vmem:[#allocation28_spill] sm:$0xff] }
 0x357   :  { %v1023_v52 = vadd.f32 %v1019_v29, %v2452_v21 }
 0x358   :  { %v1021_v41 = vadd.f32 %v1017_v4, %v997_v18  ;;  %v1022_v27 = vadd.f32 %v1018_v24, %v998_v33  ;;  %v1024_v35 = vadd.f32 %v1020_v26, %v2452_v21  ;;  %v2473_v18 = vld [vmem:[#allocation14_spill] sm:$0xff]  ;;  %v2474_v33 = vld [vmem:[#allocation13_spill] sm:$0xff] }
 0x35a   :  { %v1025_v20 = vadd.f32 %v1021_v41, %v2453_v32  ;;  %v1026_v10 = vadd.f32 %v1022_v27, %v2453_v32 }
 0x35c   :  { %v1286_v11 = vpack.c.bf16 %v1026_v10, %v1024_v35  ;;  %v1288_v30 = vpack.c.bf16 %v1025_v20, %v1023_v52 }
 0x35e   :  { %1287 = vmatprep.subr.bf16.mxu0 %v1286_v11 }
 0x35f   :  { %v495_v14 = vpop.permute.xlu1 %494  ;;  %1289 = vmatpush1.bf16.msra.mxu0 %v1288_v30 }
 0x360   :  { %v590_v45 = vadd.f32 %v2454_v15, %v495_v14  ;;  %v592_v23 = vadd.f32 %v2455_v13, %v495_v14 }
 0x362   :  { %v612_v56 = vmax.f32 %v590_v45, 0.0  ;;  %v613_v61 = vmax.f32 %v592_v23, 0.0  ;;  %1254 = vmatmul.mubr.msk.f32.vlgmr.msra.gmra.mrb[12].mxu0 %vm51_vm0, %v2460_v46 }
 0x363   :  { %v499_v47 = vpop.permute.xlu0 %498  ;;  %v2270_v60 = vpop.permute.xlu1 %503  ;;  %1097 = vmatprep.mubr.f32.mxu0 %v2463_v54 }
 0x364   :  { %v721_v1 = vadd.f32 %v2456_v3, %v612_v56  ;;  %v722_v57 = vadd.f32 %v2457_v8, %v613_v61  ;;  %v596_v0 = vadd.f32 %v2458_v19, %v499_v47  ;;  %v598_v39 = vadd.f32 %v2459_v43, %v499_v47 }
 0x365   :  { %v602_v12 = vadd.f32 %v2461_v48, %v2270_v60  ;;  %v604_v55 = vadd.f32 %v2462_v36, %v2270_v60 }
 0x366   :  { %729 = vst [vmem:[%s2353_s4] sm:$0xff] %v721_v1  ;;  %730 = vst [vmem:[%s2353_s4 + $0x8] sm:$0xff] %v722_v57  ;;  %v614_v9 = vmax.f32 %v596_v0, 0.0  ;;  %v615_v34 = vmax.f32 %v598_v39, 0.0  ;;  %1255 = vmatmul.mubr.msk.f32.gmra.mrb[14].mxu0 %vm51_vm0, %v2468_v59 }
 0x367   :  { %v616_v22 = vmax.f32 %v602_v12, 0.0  ;;  %v509_v62 = vpop.permute.xlu1 %508  ;;  %v617_v42 = vmax.f32 %v604_v55, 0.0  ;;  %1103 = vmatprep.mubr.f32.mxu0 %v2463_v54 }
 0x368   :  { %v723_v25 = vadd.f32 %v2464_v28, %v614_v9  ;;  %v724_v37 = vadd.f32 %v2465_v17, %v615_v34  ;;  %v608_v63 = vadd.f32 %v2466_v7, %v509_v62  ;;  %v610_v38 = vadd.f32 %v2467_v49, %v509_v62 }
 0x369   :  { %v725_v51 = vadd.f32 %v2469_v50, %v616_v22  ;;  %v726_v58 = vadd.f32 %v2470_v5, %v617_v42 }
 0x36a   :  { %731 = vst [vmem:[%s2353_s4 + $0x10] sm:$0xff] %v723_v25  ;;  %732 = vst [vmem:[%s2353_s4 + $0x18] sm:$0xff] %v724_v37  ;;  %v618_v40 = vmax.f32 %v608_v63, 0.0  ;;  %v619_v44 = vmax.f32 %v610_v38, 0.0  ;;  %1256 = vmatmul.mubr.msk.f32.gmra.mrb[16].mxu0 %vm51_vm0, %v2473_v18 }
 0x36b   :  { %733 = vst [vmem:[%s2353_s4 + $0x20] sm:$0xff] %v725_v51  ;;  %734 = vst [vmem:[%s2353_s4 + $0x28] sm:$0xff] %v726_v58  ;;  %1109 = vmatprep.mubr.f32.mxu0 %v2463_v54 }
 0x36c   :  { %v727_v31 = vadd.f32 %v2471_v2, %v618_v40  ;;  %v728_v6 = vadd.f32 %v2472_v16, %v619_v44 }
 0x36e   :  { %735 = vst [vmem:[%s2353_s4 + $0x30] sm:$0xff] %v727_v31  ;;  %736 = vst [vmem:[%s2353_s4 + $0x38] sm:$0xff] %v728_v6  ;;  %1257 = vmatmul.mubr.msk.f32.gmra.mrb[18].mxu0 %vm51_vm0, %v2474_v33 }
 0x37c   :  { %v1190_v29 = vpop.f32.mrb[12].mxu1 }
 0x37d   :  { %v1192_v26 = vpop.f32.mrb[13].mxu1 }
 0x380   :  { %v1196_v53 = vpop.f32.mrb[14].mxu1 }
 0x381   :  { %v1198_v4 = vpop.f32.mrb[15].mxu1 }
 0x384   :  { %v1202_v24 = vpop.f32.mrb[16].mxu1 }
 0x385   :  { %v1204_v41 = vpop.f32.mrb[17].mxu1 }
 0x388   :  { %v1208_v27 = vpop.f32.mrb[18].mxu1 }
 0x389   :  { %v1210_v21 = vpop.f32.mrb[19].mxu1 }
 0x435   :  { %v1093_v52 = vpop.f32.mrb[12].mxu0 }
 0x436   :  { %v1094_v32 = vadd.f32 %v1093_v52, %v495_v14  ;;  %v1095_v20 = vpop.f32.mrb[13].mxu0 }
 0x437   :  { %v1096_v35 = vadd.f32 %v1095_v20, %v495_v14 }
 0x438   :  { %v1116_v10 = vmax.f32 %v1094_v32, 0.0 }
 0x439   :  { %v1117_v11 = vmax.f32 %v1096_v35, 0.0  ;;  %v1099_v30 = vpop.f32.mrb[14].mxu0 }
 0x43a   :  { %v1100_v15 = vadd.f32 %v1099_v30, %v499_v47  ;;  %v1101_v45 = vpop.f32.mrb[15].mxu0  ;;  %v1213_v13 = vadd.f32 %v1190_v29, %v1116_v10 }
 0x43b   :  { %v1102_v23 = vadd.f32 %v1101_v45, %v499_v47  ;;  %v1214_v56 = vadd.f32 %v1192_v26, %v1117_v11 }
 0x43c   :  { %v1118_v61 = vmax.f32 %v1100_v15, 0.0  ;;  %1262 = vst [vmem:[%s2353_s4 + $0x40] sm:$0xff] %v1213_v13 }
 0x43d   :  { %v1119_v3 = vmax.f32 %v1102_v23, 0.0  ;;  %v1105_v1 = vpop.f32.mrb[16].mxu0  ;;  %1263 = vst [vmem:[%s2353_s4 + $0x48] sm:$0xff] %v1214_v56 }
 0x43e   :  { %v1106_v14 = vadd.f32 %v1105_v1, %v2270_v60  ;;  %v1107_v8 = vpop.f32.mrb[17].mxu0  ;;  %v1215_v57 = vadd.f32 %v1196_v53, %v1118_v61 }
 0x43f   :  { %v1108_v19 = vadd.f32 %v1107_v8, %v2270_v60  ;;  %v1216_v0 = vadd.f32 %v1198_v4, %v1119_v3 }
 0x440   :  { %v1120_v47 = vmax.f32 %v1106_v14, 0.0  ;;  %1264 = vst [vmem:[%s2353_s4 + $0x50] sm:$0xff] %v1215_v57 }
 0x441   :  { %v1121_v43 = vmax.f32 %v1108_v19, 0.0  ;;  %v1111_v39 = vpop.f32.mrb[18].mxu0  ;;  %1265 = vst [vmem:[%s2353_s4 + $0x58] sm:$0xff] %v1216_v0 }
 0x442   :  { %v1112_v46 = vadd.f32 %v1111_v39, %v509_v62  ;;  %v1113_v48 = vpop.f32.mrb[19].mxu0  ;;  %v1217_v12 = vadd.f32 %v1202_v24, %v1120_v47 }
 0x443   :  { %v1114_v36 = vadd.f32 %v1113_v48, %v509_v62  ;;  %v1218_v55 = vadd.f32 %v1204_v41, %v1121_v43 }
 0x444   :  { %v1122_v54 = vmax.f32 %v1112_v46, 0.0  ;;  %1266 = vst [vmem:[%s2353_s4 + $0x60] sm:$0xff] %v1217_v12 }
 0x445   :  { %v1123_v60 = vmax.f32 %v1114_v36, 0.0  ;;  %1267 = vst [vmem:[%s2353_s4 + $0x68] sm:$0xff] %v1218_v55 }
 0x446   :  { %v1219_v9 = vadd.f32 %v1208_v27, %v1122_v54 }
 0x447   :  { %v1220_v34 = vadd.f32 %v1210_v21, %v1123_v60 }
 0x448   :  { %1268 = vst [vmem:[%s2353_s4 + $0x70] sm:$0xff] %v1219_v9 }
 0x449   :  { %1269 = vst [vmem:[%s2353_s4 + $0x78] sm:$0xff] %v1220_v34 }

</bundles_post_ra>
